<compile_context>
chip_gen: v7x
topology: tpu7x:2x2x1
jax: 0.10.0
libtpu: 0.0.40
codegen_flags: <defaults>
</compile_context>

<pallas_src>
import jax
import jax.numpy as jnp
from jax import lax
from jax.experimental import pallas as pl
from jax.experimental.pallas import tpu as pltpu

HIDDEN = 64
INPUT_SIZE = 1
NUM_LAYERS = 2
OUTPUT_SIZE = 1
_GATE_SCALE = (0.5, 0.5, 1.0, 0.5)   # PyTorch gate order i, f, g, o


def lstm_kernel(x_ref, w_big_ref, w_x_ref, b_ref, w_fc_ref, b_fc_ref, out_ref):
    Tp1, B, _ = x_ref.shape             # (T+1, B, 1)
    G8 = w_big_ref.shape[1]             # 8H
    H = G8 // 8
    H2 = 2 * H                          # packed state width (both layers)
    T = Tp1 - 1

    def packed_update(gates, c):
        # gates: (B, 8H) pre-activations laid out [i|f|g|o], each 2H lanes wide
        # (layer-0 in lanes 0:H, layer-1 in lanes H:2H).  i/f/o pre-activations
        # were pre-scaled by 0.5 so sigmoid(z) == 0.5*tanh(z/2)+0.5; one wide
        # tanh covers every gate of both layers.
        t = jnp.tanh(gates)
        i = 0.5 * t[:, 0 * H2:1 * H2] + 0.5
        f = 0.5 * t[:, 1 * H2:2 * H2] + 0.5
        g = t[:, 2 * H2:3 * H2]
        o = 0.5 * t[:, 3 * H2:4 * H2] + 0.5
        c_new = f * c + i * g
        h_new = o * jnp.tanh(c_new)
        return h_new, c_new

    # ---- hoisted loop invariants: weight slab + prescaled x-weight / bias
    #      rows broadcast to the full (B, 8H) gate block once, not per step.
    w_big = w_big_ref[...]                                   # (2H, 8H)
    w_x = jnp.broadcast_to(w_x_ref[...], (B, G8))            # (B, 8H)
    b_all = jnp.broadcast_to(b_ref[...], (B, G8))            # (B, 8H)

    # ---- peeled timestep 0 of layer 0 (h_{-1} = c_{-1} = 0): its gates need
    #      no matmul.  Mask the layer-1 lanes back to zero so h1_{-1} =
    #      c1_{-1} = 0 entering iteration 1.
    lane = lax.broadcasted_iota(jnp.int32, (B, H2), 1)
    l0_mask = (lane < H).astype(jnp.float32)
    gates0 = x_ref[0] * w_x + b_all                          # (B,1)*(B,8H)
    h, c = packed_update(gates0, jnp.zeros((B, H2), jnp.float32))
    h = h * l0_mask
    c = c * l0_mask

    # ---- skewed pipeline: iteration t = layer-0(t) + layer-1(t-1) on the
    #      packed state.  Iteration T only finishes layer-1(T-1); its layer-0
    #      half (a zero-padded dummy timestep) is discarded.  x_t*w_x + b has
    #      no dependence on h, so under full unroll it overlaps the previous
    #      step's matmul/tanh.
    def step(t, carry):
        h, c = carry
        add_t = x_ref[t] * w_x + b_all                       # (B, 8H)
        gates = jnp.dot(h, w_big, preferred_element_type=jnp.float32) + add_t
        return packed_update(gates, c)

    h, c = lax.fori_loop(1, T + 1, step, (h, c), unroll=True)

    # ---- fc head on the final top-layer hidden state h1_{T-1} (lanes H:2H).
    h1 = h[:, H:H2]
    out_ref[...] = (jnp.sum(h1 * w_fc_ref[...], axis=-1, keepdims=True)
                    + b_fc_ref[...])


def _split_gates(w, H):
    return [w[g * H:(g + 1) * H] for g in range(4)]


def init_params(key, hidden=HIDDEN):
    """Deterministic init matching PyTorch LSTM/Linear shapes (U(-k, k), k=1/sqrt(H))."""
    H = hidden
    k = 1.0 / jnp.sqrt(jnp.float32(H))
    keys = jax.random.split(key, 11)
    u = lambda kk, shape: jax.random.uniform(kk, shape, jnp.float32, -k, k)
    return {
        "w_ih_l0": u(keys[0], (4 * H, INPUT_SIZE)),
        "w_hh_l0": u(keys[1], (4 * H, H)),
        "b_ih_l0": u(keys[2], (4 * H,)),
        "b_hh_l0": u(keys[3], (4 * H,)),
        "w_ih_l1": u(keys[4], (4 * H, H)),
        "w_hh_l1": u(keys[5], (4 * H, H)),
        "b_ih_l1": u(keys[6], (4 * H,)),
        "b_hh_l1": u(keys[7], (4 * H,)),
        "w_fc": u(keys[8], (OUTPUT_SIZE, H)),
        "b_fc": u(keys[9], (OUTPUT_SIZE,)),
    }


def pack_params(params, hidden=HIDDEN):
    """One-time parameter prepare (hoisted out of the per-call wrapper).

    Packed state layout:  h = [h_layer0 | h_layer1]             -> (B, 2H)
    Packed gate layout:   [i0 i1 | f0 f1 | g0 g1 | o0 o1]       -> (B, 8H)
    i/f/o columns and biases are pre-scaled by 0.5 so the kernel can use a
    single wide tanh for every gate (sigmoid(z) = 0.5*tanh(z/2)+0.5).
    """
    H = hidden
    w_ih0_g = _split_gates(params["w_ih_l0"][:, 0], H)                   # (H,)
    w_hh0_g = _split_gates(params["w_hh_l0"], H)                         # (H, H)
    b0_g = _split_gates(params["b_ih_l0"] + params["b_hh_l0"], H)        # (H,)
    w_ih1_g = _split_gates(params["w_ih_l1"], H)                         # (H, H)
    w_hh1_g = _split_gates(params["w_hh_l1"], H)                         # (H, H)
    b1_g = _split_gates(params["b_ih_l1"] + params["b_hh_l1"], H)        # (H,)

    zeros_hh = jnp.zeros((H, H), jnp.float32)
    zeros_h = jnp.zeros((H,), jnp.float32)
    cols, wx_cols, b_cols = [], [], []
    for g, s in enumerate(_GATE_SCALE):
        # layer-0 gate block: only the h0 rows contribute (W_hh_l0).
        cols.append(jnp.concatenate([s * w_hh0_g[g].T, zeros_hh], axis=0))
        # layer-1 gate block: h0 rows -> W_ih_l1, h1 rows -> W_hh_l1.
        cols.append(jnp.concatenate([s * w_ih1_g[g].T, s * w_hh1_g[g].T], axis=0))
        # x feeds only the layer-0 gate columns.
        wx_cols += [s * w_ih0_g[g], zeros_h]
        b_cols += [s * b0_g[g], s * b1_g[g]]

    w_big = jnp.concatenate(cols, axis=1).astype(jnp.float32)   # (2H, 8H) = (128, 512)
    w_x = jnp.concatenate(wx_cols).reshape(1, 8 * H).astype(jnp.float32)
    b_all = jnp.concatenate(b_cols).reshape(1, 8 * H).astype(jnp.float32)
    w_fc = params["w_fc"].astype(jnp.float32)                   # (1, H)
    b_fc = params["b_fc"].reshape(1, 1).astype(jnp.float32)     # (1, 1)
    return {"w_big": w_big, "w_x": w_x, "b_all": b_all, "w_fc": w_fc, "b_fc": b_fc}


def rnn_forward(x, packed):
    """x: (B, T, 1) float32, packed: pack_params(...) -> (B, 1) float32."""
    B = x.shape[0]
    x2 = x.reshape(B, -1).astype(jnp.float32)                 # (B, T), input_size == 1
    # Pad one zero dummy timestep (its layer-0 result is discarded by the
    # skewed pipeline); put T on the leading (non-lane) axis so the in-kernel
    # per-step load is a cheap first-axis index, not a lane-axis slice.
    x_pad = jnp.concatenate([x2, jnp.zeros((B, 1), jnp.float32)], axis=1)
    x3 = x_pad.T[:, :, None]                                   # (T+1, B, 1)

    vmem = pl.BlockSpec(memory_space=pltpu.MemorySpace.VMEM)
    # Everything is tiny and VMEM-resident (w_big = 256 KiB, x = 4 KiB/step).
    # For very long T, chunk the leading time axis of x with an "arbitrary"
    # grid axis and carry h/c in VMEM scratch; not needed at these sizes.
    return pl.pallas_call(
        lstm_kernel,
        out_shape=jax.ShapeDtypeStruct((B, OUTPUT_SIZE), jnp.float32),
        in_specs=[vmem] * 6,
        out_specs=vmem,
    )(x3, packed["w_big"], packed["w_x"], packed["b_all"],
      packed["w_fc"], packed["b_fc"])


def rnn_forward_ref(x, params):
    """Pure-JAX reference (PyTorch LSTM gate order i, f, g, o)."""
    B = x.shape[0]
    H = HIDDEN
    x2 = x.reshape(B, -1, 1).astype(jnp.float32)
    T = x2.shape[1]

    def lstm_layer(inp, w_ih, w_hh, b_ih, b_hh):
        h = jnp.zeros((B, H), jnp.float32)
        c = jnp.zeros((B, H), jnp.float32)
        outs = []
        for t in range(T):
            g = inp[:, t, :] @ w_ih.T + b_ih + h @ w_hh.T + b_hh
            i = jax.nn.sigmoid(g[:, 0 * H:1 * H])
            f = jax.nn.sigmoid(g[:, 1 * H:2 * H])
            gg = jnp.tanh(g[:, 2 * H:3 * H])
            o = jax.nn.sigmoid(g[:, 3 * H:4 * H])
            c = f * c + i * gg
            h = o * jnp.tanh(c)
            outs.append(h)
        return jnp.stack(outs, axis=1)

    out0 = lstm_layer(x2, params["w_ih_l0"], params["w_hh_l0"],
                      params["b_ih_l0"], params["b_hh_l0"])
    out1 = lstm_layer(out0, params["w_ih_l1"], params["w_hh_l1"],
                      params["b_ih_l1"], params["b_hh_l1"])
    last = out1[:, -1, :]
    return last @ params["w_fc"].T + params["b_fc"]


if __name__ == "__main__":
    key = jax.random.PRNGKey(0)
    k_x, k_p = jax.random.split(key)

    B, T = 2, 8
    x = jax.random.normal(k_x, (B, T, 1), jnp.float32)
    params = init_params(k_p)

    packed = jax.tree_util.tree_map(jax.block_until_ready, pack_params(params))
    fwd = jax.jit(rnn_forward)

    out = jax.block_until_ready(fwd(x, packed))
    ref = rnn_forward_ref(x, params)

    assert out.shape == (B, OUTPUT_SIZE)
    assert jnp.allclose(out, ref, atol=1e-4, rtol=1e-4), (out, ref)
    print("KERNEL_OK")
</pallas_src>

<mosaic_0001>
module attributes {stable_mosaic.version = 11 : i64} {
  func.func @lstm_kernel(%arg0: memref<9x2x1xf32, #tpu.memory_space<vmem>>, %arg1: memref<128x512xf32, #tpu.memory_space<vmem>>, %arg2: memref<1x512xf32, #tpu.memory_space<vmem>>, %arg3: memref<1x512xf32, #tpu.memory_space<vmem>>, %arg4: memref<1x64xf32, #tpu.memory_space<vmem>>, %arg5: memref<1x1xf32, #tpu.memory_space<vmem>>, %arg6: memref<2x1xf32, #tpu.memory_space<vmem>>) attributes {dimension_semantics = [], scalar_prefetch = 0 : i64, scratch_operands = 0 : i64, tpu.core_type = #tpu.core_type<tc>} {
    %c0 = arith.constant 0 : index
    %c0_0 = arith.constant 0 : index
    %0 = vector.load %arg1[%c0, %c0_0] : memref<128x512xf32, #tpu.memory_space<vmem>>, vector<128x512xf32>
    %c0_1 = arith.constant 0 : index
    %c0_2 = arith.constant 0 : index
    %1 = vector.load %arg2[%c0_1, %c0_2] : memref<1x512xf32, #tpu.memory_space<vmem>>, vector<1x512xf32>
    %2 = vector.shape_cast %1 : vector<1x512xf32> to vector<1x512xf32>
    %3 = vector.broadcast %2 : vector<1x512xf32> to vector<2x512xf32>
    %c0_3 = arith.constant 0 : index
    %c0_4 = arith.constant 0 : index
    %4 = vector.load %arg3[%c0_3, %c0_4] : memref<1x512xf32, #tpu.memory_space<vmem>>, vector<1x512xf32>
    %5 = vector.shape_cast %4 : vector<1x512xf32> to vector<1x512xf32>
    %6 = vector.broadcast %5 : vector<1x512xf32> to vector<2x512xf32>
    %7 = tpu.iota {dimensions = array<i32: 1>} : vector<2x128xi32>
    %c64_i32 = arith.constant 64 : i32
    %8 = vector.broadcast %c64_i32 : i32 to vector<2x128xi32>
    %9 = arith.cmpi slt, %7, %8 : vector<2x128xi32>
    %10 = arith.extui %9 : vector<2x128xi1> to vector<2x128xi32>
    %11 = arith.sitofp %10 : vector<2x128xi32> to vector<2x128xf32>
    %c0_5 = arith.constant 0 : index
    %c0_6 = arith.constant 0 : index
    %c0_7 = arith.constant 0 : index
    %12 = vector.load %arg0[%c0_5, %c0_6, %c0_7] : memref<9x2x1xf32, #tpu.memory_space<vmem>>, vector<1x2x1xf32>
    %13 = vector.shape_cast %12 : vector<1x2x1xf32> to vector<2x1xf32>
    %14 = vector.broadcast %13 : vector<2x1xf32> to vector<2x512xf32>
    %15 = arith.mulf %14, %3 : vector<2x512xf32>
    %16 = arith.addf %15, %6 : vector<2x512xf32>
    %cst = arith.constant 0.000000e+00 : f32
    %17 = vector.broadcast %cst : f32 to vector<2x128xf32>
    %18 = math.tanh %16 : vector<2x512xf32>
    %19 = vector.extract_strided_slice %18 {offsets = [0, 0], sizes = [2, 128], strides = [1, 1]} : vector<2x512xf32> to vector<2x128xf32>
    %cst_8 = arith.constant 5.000000e-01 : f32
    %20 = vector.broadcast %cst_8 : f32 to vector<2x128xf32>
    %21 = arith.mulf %20, %19 : vector<2x128xf32>
    %cst_9 = arith.constant 5.000000e-01 : f32
    %22 = vector.broadcast %cst_9 : f32 to vector<2x128xf32>
    %23 = arith.addf %21, %22 : vector<2x128xf32>
    %24 = vector.extract_strided_slice %18 {offsets = [0, 128], sizes = [2, 128], strides = [1, 1]} : vector<2x512xf32> to vector<2x128xf32>
    %cst_10 = arith.constant 5.000000e-01 : f32
    %25 = vector.broadcast %cst_10 : f32 to vector<2x128xf32>
    %26 = arith.mulf %25, %24 : vector<2x128xf32>
    %cst_11 = arith.constant 5.000000e-01 : f32
    %27 = vector.broadcast %cst_11 : f32 to vector<2x128xf32>
    %28 = arith.addf %26, %27 : vector<2x128xf32>
    %29 = vector.extract_strided_slice %18 {offsets = [0, 256], sizes = [2, 128], strides = [1, 1]} : vector<2x512xf32> to vector<2x128xf32>
    %30 = vector.extract_strided_slice %18 {offsets = [0, 384], sizes = [2, 128], strides = [1, 1]} : vector<2x512xf32> to vector<2x128xf32>
    %cst_12 = arith.constant 5.000000e-01 : f32
    %31 = vector.broadcast %cst_12 : f32 to vector<2x128xf32>
    %32 = arith.mulf %31, %30 : vector<2x128xf32>
    %cst_13 = arith.constant 5.000000e-01 : f32
    %33 = vector.broadcast %cst_13 : f32 to vector<2x128xf32>
    %34 = arith.addf %32, %33 : vector<2x128xf32>
    %35 = arith.mulf %28, %17 : vector<2x128xf32>
    %36 = arith.mulf %23, %29 : vector<2x128xf32>
    %37 = arith.addf %35, %36 : vector<2x128xf32>
    %38 = math.tanh %37 : vector<2x128xf32>
    %39 = arith.mulf %34, %38 : vector<2x128xf32>
    %40 = arith.mulf %39, %11 : vector<2x128xf32>
    %41 = arith.mulf %37, %11 : vector<2x128xf32>
    %c1_i32 = arith.constant 1 : i32
    %42 = arith.index_cast %c1_i32 : i32 to index
    %c0_14 = arith.constant 0 : index
    %c0_15 = arith.constant 0 : index
    %43 = vector.load %arg0[%42, %c0_14, %c0_15] : memref<9x2x1xf32, #tpu.memory_space<vmem>>, vector<1x2x1xf32>
    %44 = vector.shape_cast %43 : vector<1x2x1xf32> to vector<2x1xf32>
    %45 = vector.broadcast %44 : vector<2x1xf32> to vector<2x512xf32>
    %46 = arith.mulf %45, %3 : vector<2x512xf32>
    %47 = arith.addf %46, %6 : vector<2x512xf32>
    %cst_16 = arith.constant dense<0.000000e+00> : vector<2x512xf32>
    %48 = tpu.matmul %40, %0, %cst_16 {dimension_numbers = #tpu.dot_dimension_numbers<[1], [0], [0], [1], [0, 0, 1, 1], [], []>} : vector<2x128xf32>, vector<128x512xf32>, vector<2x512xf32> -> vector<2x512xf32>
    %49 = arith.addf %48, %47 : vector<2x512xf32>
    %50 = math.tanh %49 : vector<2x512xf32>
    %51 = vector.extract_strided_slice %50 {offsets = [0, 0], sizes = [2, 128], strides = [1, 1]} : vector<2x512xf32> to vector<2x128xf32>
    %cst_17 = arith.constant 5.000000e-01 : f32
    %52 = vector.broadcast %cst_17 : f32 to vector<2x128xf32>
    %53 = arith.mulf %52, %51 : vector<2x128xf32>
    %cst_18 = arith.constant 5.000000e-01 : f32
    %54 = vector.broadcast %cst_18 : f32 to vector<2x128xf32>
    %55 = arith.addf %53, %54 : vector<2x128xf32>
    %56 = vector.extract_strided_slice %50 {offsets = [0, 128], sizes = [2, 128], strides = [1, 1]} : vector<2x512xf32> to vector<2x128xf32>
    %cst_19 = arith.constant 5.000000e-01 : f32
    %57 = vector.broadcast %cst_19 : f32 to vector<2x128xf32>
    %58 = arith.mulf %57, %56 : vector<2x128xf32>
    %cst_20 = arith.constant 5.000000e-01 : f32
    %59 = vector.broadcast %cst_20 : f32 to vector<2x128xf32>
    %60 = arith.addf %58, %59 : vector<2x128xf32>
    %61 = vector.extract_strided_slice %50 {offsets = [0, 256], sizes = [2, 128], strides = [1, 1]} : vector<2x512xf32> to vector<2x128xf32>
    %62 = vector.extract_strided_slice %50 {offsets = [0, 384], sizes = [2, 128], strides = [1, 1]} : vector<2x512xf32> to vector<2x128xf32>
    %cst_21 = arith.constant 5.000000e-01 : f32
    %63 = vector.broadcast %cst_21 : f32 to vector<2x128xf32>
    %64 = arith.mulf %63, %62 : vector<2x128xf32>
    %cst_22 = arith.constant 5.000000e-01 : f32
    %65 = vector.broadcast %cst_22 : f32 to vector<2x128xf32>
    %66 = arith.addf %64, %65 : vector<2x128xf32>
    %67 = arith.mulf %60, %41 : vector<2x128xf32>
    %68 = arith.mulf %55, %61 : vector<2x128xf32>
    %69 = arith.addf %67, %68 : vector<2x128xf32>
    %70 = math.tanh %69 : vector<2x128xf32>
    %71 = arith.mulf %66, %70 : vector<2x128xf32>
    %c2_i32 = arith.constant 2 : i32
    %72 = arith.index_cast %c2_i32 : i32 to index
    %c0_23 = arith.constant 0 : index
    %c0_24 = arith.constant 0 : index
    %73 = vector.load %arg0[%72, %c0_23, %c0_24] : memref<9x2x1xf32, #tpu.memory_space<vmem>>, vector<1x2x1xf32>
    %74 = vector.shape_cast %73 : vector<1x2x1xf32> to vector<2x1xf32>
    %75 = vector.broadcast %74 : vector<2x1xf32> to vector<2x512xf32>
    %76 = arith.mulf %75, %3 : vector<2x512xf32>
    %77 = arith.addf %76, %6 : vector<2x512xf32>
    %cst_25 = arith.constant dense<0.000000e+00> : vector<2x512xf32>
    %78 = tpu.matmul %71, %0, %cst_25 {dimension_numbers = #tpu.dot_dimension_numbers<[1], [0], [0], [1], [0, 0, 1, 1], [], []>} : vector<2x128xf32>, vector<128x512xf32>, vector<2x512xf32> -> vector<2x512xf32>
    %79 = arith.addf %78, %77 : vector<2x512xf32>
    %80 = math.tanh %79 : vector<2x512xf32>
    %81 = vector.extract_strided_slice %80 {offsets = [0, 0], sizes = [2, 128], strides = [1, 1]} : vector<2x512xf32> to vector<2x128xf32>
    %cst_26 = arith.constant 5.000000e-01 : f32
    %82 = vector.broadcast %cst_26 : f32 to vector<2x128xf32>
    %83 = arith.mulf %82, %81 : vector<2x128xf32>
    %cst_27 = arith.constant 5.000000e-01 : f32
    %84 = vector.broadcast %cst_27 : f32 to vector<2x128xf32>
    %85 = arith.addf %83, %84 : vector<2x128xf32>
    %86 = vector.extract_strided_slice %80 {offsets = [0, 128], sizes = [2, 128], strides = [1, 1]} : vector<2x512xf32> to vector<2x128xf32>
    %cst_28 = arith.constant 5.000000e-01 : f32
    %87 = vector.broadcast %cst_28 : f32 to vector<2x128xf32>
    %88 = arith.mulf %87, %86 : vector<2x128xf32>
    %cst_29 = arith.constant 5.000000e-01 : f32
    %89 = vector.broadcast %cst_29 : f32 to vector<2x128xf32>
    %90 = arith.addf %88, %89 : vector<2x128xf32>
    %91 = vector.extract_strided_slice %80 {offsets = [0, 256], sizes = [2, 128], strides = [1, 1]} : vector<2x512xf32> to vector<2x128xf32>
    %92 = vector.extract_strided_slice %80 {offsets = [0, 384], sizes = [2, 128], strides = [1, 1]} : vector<2x512xf32> to vector<2x128xf32>
    %cst_30 = arith.constant 5.000000e-01 : f32
    %93 = vector.broadcast %cst_30 : f32 to vector<2x128xf32>
    %94 = arith.mulf %93, %92 : vector<2x128xf32>
    %cst_31 = arith.constant 5.000000e-01 : f32
    %95 = vector.broadcast %cst_31 : f32 to vector<2x128xf32>
    %96 = arith.addf %94, %95 : vector<2x128xf32>
    %97 = arith.mulf %90, %69 : vector<2x128xf32>
    %98 = arith.mulf %85, %91 : vector<2x128xf32>
    %99 = arith.addf %97, %98 : vector<2x128xf32>
    %100 = math.tanh %99 : vector<2x128xf32>
    %101 = arith.mulf %96, %100 : vector<2x128xf32>
    %c3_i32 = arith.constant 3 : i32
    %102 = arith.index_cast %c3_i32 : i32 to index
    %c0_32 = arith.constant 0 : index
    %c0_33 = arith.constant 0 : index
    %103 = vector.load %arg0[%102, %c0_32, %c0_33] : memref<9x2x1xf32, #tpu.memory_space<vmem>>, vector<1x2x1xf32>
    %104 = vector.shape_cast %103 : vector<1x2x1xf32> to vector<2x1xf32>
    %105 = vector.broadcast %104 : vector<2x1xf32> to vector<2x512xf32>
    %106 = arith.mulf %105, %3 : vector<2x512xf32>
    %107 = arith.addf %106, %6 : vector<2x512xf32>
    %cst_34 = arith.constant dense<0.000000e+00> : vector<2x512xf32>
    %108 = tpu.matmul %101, %0, %cst_34 {dimension_numbers = #tpu.dot_dimension_numbers<[1], [0], [0], [1], [0, 0, 1, 1], [], []>} : vector<2x128xf32>, vector<128x512xf32>, vector<2x512xf32> -> vector<2x512xf32>
    %109 = arith.addf %108, %107 : vector<2x512xf32>
    %110 = math.tanh %109 : vector<2x512xf32>
    %111 = vector.extract_strided_slice %110 {offsets = [0, 0], sizes = [2, 128], strides = [1, 1]} : vector<2x512xf32> to vector<2x128xf32>
    %cst_35 = arith.constant 5.000000e-01 : f32
    %112 = vector.broadcast %cst_35 : f32 to vector<2x128xf32>
    %113 = arith.mulf %112, %111 : vector<2x128xf32>
    %cst_36 = arith.constant 5.000000e-01 : f32
    %114 = vector.broadcast %cst_36 : f32 to vector<2x128xf32>
    %115 = arith.addf %113, %114 : vector<2x128xf32>
    %116 = vector.extract_strided_slice %110 {offsets = [0, 128], sizes = [2, 128], strides = [1, 1]} : vector<2x512xf32> to vector<2x128xf32>
    %cst_37 = arith.constant 5.000000e-01 : f32
    %117 = vector.broadcast %cst_37 : f32 to vector<2x128xf32>
    %118 = arith.mulf %117, %116 : vector<2x128xf32>
    %cst_38 = arith.constant 5.000000e-01 : f32
    %119 = vector.broadcast %cst_38 : f32 to vector<2x128xf32>
    %120 = arith.addf %118, %119 : vector<2x128xf32>
    %121 = vector.extract_strided_slice %110 {offsets = [0, 256], sizes = [2, 128], strides = [1, 1]} : vector<2x512xf32> to vector<2x128xf32>
    %122 = vector.extract_strided_slice %110 {offsets = [0, 384], sizes = [2, 128], strides = [1, 1]} : vector<2x512xf32> to vector<2x128xf32>
    %cst_39 = arith.constant 5.000000e-01 : f32
    %123 = vector.broadcast %cst_39 : f32 to vector<2x128xf32>
    %124 = arith.mulf %123, %122 : vector<2x128xf32>
    %cst_40 = arith.constant 5.000000e-01 : f32
    %125 = vector.broadcast %cst_40 : f32 to vector<2x128xf32>
    %126 = arith.addf %124, %125 : vector<2x128xf32>
    %127 = arith.mulf %120, %99 : vector<2x128xf32>
    %128 = arith.mulf %115, %121 : vector<2x128xf32>
    %129 = arith.addf %127, %128 : vector<2x128xf32>
    %130 = math.tanh %129 : vector<2x128xf32>
    %131 = arith.mulf %126, %130 : vector<2x128xf32>
    %c4_i32 = arith.constant 4 : i32
    %132 = arith.index_cast %c4_i32 : i32 to index
    %c0_41 = arith.constant 0 : index
    %c0_42 = arith.constant 0 : index
    %133 = vector.load %arg0[%132, %c0_41, %c0_42] : memref<9x2x1xf32, #tpu.memory_space<vmem>>, vector<1x2x1xf32>
    %134 = vector.shape_cast %133 : vector<1x2x1xf32> to vector<2x1xf32>
    %135 = vector.broadcast %134 : vector<2x1xf32> to vector<2x512xf32>
    %136 = arith.mulf %135, %3 : vector<2x512xf32>
    %137 = arith.addf %136, %6 : vector<2x512xf32>
    %cst_43 = arith.constant dense<0.000000e+00> : vector<2x512xf32>
    %138 = tpu.matmul %131, %0, %cst_43 {dimension_numbers = #tpu.dot_dimension_numbers<[1], [0], [0], [1], [0, 0, 1, 1], [], []>} : vector<2x128xf32>, vector<128x512xf32>, vector<2x512xf32> -> vector<2x512xf32>
    %139 = arith.addf %138, %137 : vector<2x512xf32>
    %140 = math.tanh %139 : vector<2x512xf32>
    %141 = vector.extract_strided_slice %140 {offsets = [0, 0], sizes = [2, 128], strides = [1, 1]} : vector<2x512xf32> to vector<2x128xf32>
    %cst_44 = arith.constant 5.000000e-01 : f32
    %142 = vector.broadcast %cst_44 : f32 to vector<2x128xf32>
    %143 = arith.mulf %142, %141 : vector<2x128xf32>
    %cst_45 = arith.constant 5.000000e-01 : f32
    %144 = vector.broadcast %cst_45 : f32 to vector<2x128xf32>
    %145 = arith.addf %143, %144 : vector<2x128xf32>
    %146 = vector.extract_strided_slice %140 {offsets = [0, 128], sizes = [2, 128], strides = [1, 1]} : vector<2x512xf32> to vector<2x128xf32>
    %cst_46 = arith.constant 5.000000e-01 : f32
    %147 = vector.broadcast %cst_46 : f32 to vector<2x128xf32>
    %148 = arith.mulf %147, %146 : vector<2x128xf32>
    %cst_47 = arith.constant 5.000000e-01 : f32
    %149 = vector.broadcast %cst_47 : f32 to vector<2x128xf32>
    %150 = arith.addf %148, %149 : vector<2x128xf32>
    %151 = vector.extract_strided_slice %140 {offsets = [0, 256], sizes = [2, 128], strides = [1, 1]} : vector<2x512xf32> to vector<2x128xf32>
    %152 = vector.extract_strided_slice %140 {offsets = [0, 384], sizes = [2, 128], strides = [1, 1]} : vector<2x512xf32> to vector<2x128xf32>
    %cst_48 = arith.constant 5.000000e-01 : f32
    %153 = vector.broadcast %cst_48 : f32 to vector<2x128xf32>
    %154 = arith.mulf %153, %152 : vector<2x128xf32>
    %cst_49 = arith.constant 5.000000e-01 : f32
    %155 = vector.broadcast %cst_49 : f32 to vector<2x128xf32>
    %156 = arith.addf %154, %155 : vector<2x128xf32>
    %157 = arith.mulf %150, %129 : vector<2x128xf32>
    %158 = arith.mulf %145, %151 : vector<2x128xf32>
    %159 = arith.addf %157, %158 : vector<2x128xf32>
    %160 = math.tanh %159 : vector<2x128xf32>
    %161 = arith.mulf %156, %160 : vector<2x128xf32>
    %c5_i32 = arith.constant 5 : i32
    %162 = arith.index_cast %c5_i32 : i32 to index
    %c0_50 = arith.constant 0 : index
    %c0_51 = arith.constant 0 : index
    %163 = vector.load %arg0[%162, %c0_50, %c0_51] : memref<9x2x1xf32, #tpu.memory_space<vmem>>, vector<1x2x1xf32>
    %164 = vector.shape_cast %163 : vector<1x2x1xf32> to vector<2x1xf32>
    %165 = vector.broadcast %164 : vector<2x1xf32> to vector<2x512xf32>
    %166 = arith.mulf %165, %3 : vector<2x512xf32>
    %167 = arith.addf %166, %6 : vector<2x512xf32>
    %cst_52 = arith.constant dense<0.000000e+00> : vector<2x512xf32>
    %168 = tpu.matmul %161, %0, %cst_52 {dimension_numbers = #tpu.dot_dimension_numbers<[1], [0], [0], [1], [0, 0, 1, 1], [], []>} : vector<2x128xf32>, vector<128x512xf32>, vector<2x512xf32> -> vector<2x512xf32>
    %169 = arith.addf %168, %167 : vector<2x512xf32>
    %170 = math.tanh %169 : vector<2x512xf32>
    %171 = vector.extract_strided_slice %170 {offsets = [0, 0], sizes = [2, 128], strides = [1, 1]} : vector<2x512xf32> to vector<2x128xf32>
    %cst_53 = arith.constant 5.000000e-01 : f32
    %172 = vector.broadcast %cst_53 : f32 to vector<2x128xf32>
    %173 = arith.mulf %172, %171 : vector<2x128xf32>
    %cst_54 = arith.constant 5.000000e-01 : f32
    %174 = vector.broadcast %cst_54 : f32 to vector<2x128xf32>
    %175 = arith.addf %173, %174 : vector<2x128xf32>
    %176 = vector.extract_strided_slice %170 {offsets = [0, 128], sizes = [2, 128], strides = [1, 1]} : vector<2x512xf32> to vector<2x128xf32>
    %cst_55 = arith.constant 5.000000e-01 : f32
    %177 = vector.broadcast %cst_55 : f32 to vector<2x128xf32>
    %178 = arith.mulf %177, %176 : vector<2x128xf32>
    %cst_56 = arith.constant 5.000000e-01 : f32
    %179 = vector.broadcast %cst_56 : f32 to vector<2x128xf32>
    %180 = arith.addf %178, %179 : vector<2x128xf32>
    %181 = vector.extract_strided_slice %170 {offsets = [0, 256], sizes = [2, 128], strides = [1, 1]} : vector<2x512xf32> to vector<2x128xf32>
    %182 = vector.extract_strided_slice %170 {offsets = [0, 384], sizes = [2, 128], strides = [1, 1]} : vector<2x512xf32> to vector<2x128xf32>
    %cst_57 = arith.constant 5.000000e-01 : f32
    %183 = vector.broadcast %cst_57 : f32 to vector<2x128xf32>
    %184 = arith.mulf %183, %182 : vector<2x128xf32>
    %cst_58 = arith.constant 5.000000e-01 : f32
    %185 = vector.broadcast %cst_58 : f32 to vector<2x128xf32>
    %186 = arith.addf %184, %185 : vector<2x128xf32>
    %187 = arith.mulf %180, %159 : vector<2x128xf32>
    %188 = arith.mulf %175, %181 : vector<2x128xf32>
    %189 = arith.addf %187, %188 : vector<2x128xf32>
    %190 = math.tanh %189 : vector<2x128xf32>
    %191 = arith.mulf %186, %190 : vector<2x128xf32>
    %c6_i32 = arith.constant 6 : i32
    %192 = arith.index_cast %c6_i32 : i32 to index
    %c0_59 = arith.constant 0 : index
    %c0_60 = arith.constant 0 : index
    %193 = vector.load %arg0[%192, %c0_59, %c0_60] : memref<9x2x1xf32, #tpu.memory_space<vmem>>, vector<1x2x1xf32>
    %194 = vector.shape_cast %193 : vector<1x2x1xf32> to vector<2x1xf32>
    %195 = vector.broadcast %194 : vector<2x1xf32> to vector<2x512xf32>
    %196 = arith.mulf %195, %3 : vector<2x512xf32>
    %197 = arith.addf %196, %6 : vector<2x512xf32>
    %cst_61 = arith.constant dense<0.000000e+00> : vector<2x512xf32>
    %198 = tpu.matmul %191, %0, %cst_61 {dimension_numbers = #tpu.dot_dimension_numbers<[1], [0], [0], [1], [0, 0, 1, 1], [], []>} : vector<2x128xf32>, vector<128x512xf32>, vector<2x512xf32> -> vector<2x512xf32>
    %199 = arith.addf %198, %197 : vector<2x512xf32>
    %200 = math.tanh %199 : vector<2x512xf32>
    %201 = vector.extract_strided_slice %200 {offsets = [0, 0], sizes = [2, 128], strides = [1, 1]} : vector<2x512xf32> to vector<2x128xf32>
    %cst_62 = arith.constant 5.000000e-01 : f32
    %202 = vector.broadcast %cst_62 : f32 to vector<2x128xf32>
    %203 = arith.mulf %202, %201 : vector<2x128xf32>
    %cst_63 = arith.constant 5.000000e-01 : f32
    %204 = vector.broadcast %cst_63 : f32 to vector<2x128xf32>
    %205 = arith.addf %203, %204 : vector<2x128xf32>
    %206 = vector.extract_strided_slice %200 {offsets = [0, 128], sizes = [2, 128], strides = [1, 1]} : vector<2x512xf32> to vector<2x128xf32>
    %cst_64 = arith.constant 5.000000e-01 : f32
    %207 = vector.broadcast %cst_64 : f32 to vector<2x128xf32>
    %208 = arith.mulf %207, %206 : vector<2x128xf32>
    %cst_65 = arith.constant 5.000000e-01 : f32
    %209 = vector.broadcast %cst_65 : f32 to vector<2x128xf32>
    %210 = arith.addf %208, %209 : vector<2x128xf32>
    %211 = vector.extract_strided_slice %200 {offsets = [0, 256], sizes = [2, 128], strides = [1, 1]} : vector<2x512xf32> to vector<2x128xf32>
    %212 = vector.extract_strided_slice %200 {offsets = [0, 384], sizes = [2, 128], strides = [1, 1]} : vector<2x512xf32> to vector<2x128xf32>
    %cst_66 = arith.constant 5.000000e-01 : f32
    %213 = vector.broadcast %cst_66 : f32 to vector<2x128xf32>
    %214 = arith.mulf %213, %212 : vector<2x128xf32>
    %cst_67 = arith.constant 5.000000e-01 : f32
    %215 = vector.broadcast %cst_67 : f32 to vector<2x128xf32>
    %216 = arith.addf %214, %215 : vector<2x128xf32>
    %217 = arith.mulf %210, %189 : vector<2x128xf32>
    %218 = arith.mulf %205, %211 : vector<2x128xf32>
    %219 = arith.addf %217, %218 : vector<2x128xf32>
    %220 = math.tanh %219 : vector<2x128xf32>
    %221 = arith.mulf %216, %220 : vector<2x128xf32>
    %c7_i32 = arith.constant 7 : i32
    %222 = arith.index_cast %c7_i32 : i32 to index
    %c0_68 = arith.constant 0 : index
    %c0_69 = arith.constant 0 : index
    %223 = vector.load %arg0[%222, %c0_68, %c0_69] : memref<9x2x1xf32, #tpu.memory_space<vmem>>, vector<1x2x1xf32>
    %224 = vector.shape_cast %223 : vector<1x2x1xf32> to vector<2x1xf32>
    %225 = vector.broadcast %224 : vector<2x1xf32> to vector<2x512xf32>
    %226 = arith.mulf %225, %3 : vector<2x512xf32>
    %227 = arith.addf %226, %6 : vector<2x512xf32>
    %cst_70 = arith.constant dense<0.000000e+00> : vector<2x512xf32>
    %228 = tpu.matmul %221, %0, %cst_70 {dimension_numbers = #tpu.dot_dimension_numbers<[1], [0], [0], [1], [0, 0, 1, 1], [], []>} : vector<2x128xf32>, vector<128x512xf32>, vector<2x512xf32> -> vector<2x512xf32>
    %229 = arith.addf %228, %227 : vector<2x512xf32>
    %230 = math.tanh %229 : vector<2x512xf32>
    %231 = vector.extract_strided_slice %230 {offsets = [0, 0], sizes = [2, 128], strides = [1, 1]} : vector<2x512xf32> to vector<2x128xf32>
    %cst_71 = arith.constant 5.000000e-01 : f32
    %232 = vector.broadcast %cst_71 : f32 to vector<2x128xf32>
    %233 = arith.mulf %232, %231 : vector<2x128xf32>
    %cst_72 = arith.constant 5.000000e-01 : f32
    %234 = vector.broadcast %cst_72 : f32 to vector<2x128xf32>
    %235 = arith.addf %233, %234 : vector<2x128xf32>
    %236 = vector.extract_strided_slice %230 {offsets = [0, 128], sizes = [2, 128], strides = [1, 1]} : vector<2x512xf32> to vector<2x128xf32>
    %cst_73 = arith.constant 5.000000e-01 : f32
    %237 = vector.broadcast %cst_73 : f32 to vector<2x128xf32>
    %238 = arith.mulf %237, %236 : vector<2x128xf32>
    %cst_74 = arith.constant 5.000000e-01 : f32
    %239 = vector.broadcast %cst_74 : f32 to vector<2x128xf32>
    %240 = arith.addf %238, %239 : vector<2x128xf32>
    %241 = vector.extract_strided_slice %230 {offsets = [0, 256], sizes = [2, 128], strides = [1, 1]} : vector<2x512xf32> to vector<2x128xf32>
    %242 = vector.extract_strided_slice %230 {offsets = [0, 384], sizes = [2, 128], strides = [1, 1]} : vector<2x512xf32> to vector<2x128xf32>
    %cst_75 = arith.constant 5.000000e-01 : f32
    %243 = vector.broadcast %cst_75 : f32 to vector<2x128xf32>
    %244 = arith.mulf %243, %242 : vector<2x128xf32>
    %cst_76 = arith.constant 5.000000e-01 : f32
    %245 = vector.broadcast %cst_76 : f32 to vector<2x128xf32>
    %246 = arith.addf %244, %245 : vector<2x128xf32>
    %247 = arith.mulf %240, %219 : vector<2x128xf32>
    %248 = arith.mulf %235, %241 : vector<2x128xf32>
    %249 = arith.addf %247, %248 : vector<2x128xf32>
    %250 = math.tanh %249 : vector<2x128xf32>
    %251 = arith.mulf %246, %250 : vector<2x128xf32>
    %c8_i32 = arith.constant 8 : i32
    %252 = arith.index_cast %c8_i32 : i32 to index
    %c0_77 = arith.constant 0 : index
    %c0_78 = arith.constant 0 : index
    %253 = vector.load %arg0[%252, %c0_77, %c0_78] : memref<9x2x1xf32, #tpu.memory_space<vmem>>, vector<1x2x1xf32>
    %254 = vector.shape_cast %253 : vector<1x2x1xf32> to vector<2x1xf32>
    %255 = vector.broadcast %254 : vector<2x1xf32> to vector<2x512xf32>
    %256 = arith.mulf %255, %3 : vector<2x512xf32>
    %257 = arith.addf %256, %6 : vector<2x512xf32>
    %cst_79 = arith.constant dense<0.000000e+00> : vector<2x512xf32>
    %258 = tpu.matmul %251, %0, %cst_79 {dimension_numbers = #tpu.dot_dimension_numbers<[1], [0], [0], [1], [0, 0, 1, 1], [], []>} : vector<2x128xf32>, vector<128x512xf32>, vector<2x512xf32> -> vector<2x512xf32>
    %259 = arith.addf %258, %257 : vector<2x512xf32>
    %260 = math.tanh %259 : vector<2x512xf32>
    %261 = vector.extract_strided_slice %260 {offsets = [0, 0], sizes = [2, 128], strides = [1, 1]} : vector<2x512xf32> to vector<2x128xf32>
    %cst_80 = arith.constant 5.000000e-01 : f32
    %262 = vector.broadcast %cst_80 : f32 to vector<2x128xf32>
    %263 = arith.mulf %262, %261 : vector<2x128xf32>
    %cst_81 = arith.constant 5.000000e-01 : f32
    %264 = vector.broadcast %cst_81 : f32 to vector<2x128xf32>
    %265 = arith.addf %263, %264 : vector<2x128xf32>
    %266 = vector.extract_strided_slice %260 {offsets = [0, 128], sizes = [2, 128], strides = [1, 1]} : vector<2x512xf32> to vector<2x128xf32>
    %cst_82 = arith.constant 5.000000e-01 : f32
    %267 = vector.broadcast %cst_82 : f32 to vector<2x128xf32>
    %268 = arith.mulf %267, %266 : vector<2x128xf32>
    %cst_83 = arith.constant 5.000000e-01 : f32
    %269 = vector.broadcast %cst_83 : f32 to vector<2x128xf32>
    %270 = arith.addf %268, %269 : vector<2x128xf32>
    %271 = vector.extract_strided_slice %260 {offsets = [0, 256], sizes = [2, 128], strides = [1, 1]} : vector<2x512xf32> to vector<2x128xf32>
    %272 = vector.extract_strided_slice %260 {offsets = [0, 384], sizes = [2, 128], strides = [1, 1]} : vector<2x512xf32> to vector<2x128xf32>
    %cst_84 = arith.constant 5.000000e-01 : f32
    %273 = vector.broadcast %cst_84 : f32 to vector<2x128xf32>
    %274 = arith.mulf %273, %272 : vector<2x128xf32>
    %cst_85 = arith.constant 5.000000e-01 : f32
    %275 = vector.broadcast %cst_85 : f32 to vector<2x128xf32>
    %276 = arith.addf %274, %275 : vector<2x128xf32>
    %277 = arith.mulf %270, %249 : vector<2x128xf32>
    %278 = arith.mulf %265, %271 : vector<2x128xf32>
    %279 = arith.addf %277, %278 : vector<2x128xf32>
    %280 = math.tanh %279 : vector<2x128xf32>
    %281 = arith.mulf %276, %280 : vector<2x128xf32>
    %c8_i32_86 = arith.constant 8 : i32
    %282 = vector.extract_strided_slice %281 {offsets = [0, 64], sizes = [2, 64], strides = [1, 1]} : vector<2x128xf32> to vector<2x64xf32>
    %c0_87 = arith.constant 0 : index
    %c0_88 = arith.constant 0 : index
    %283 = vector.load %arg4[%c0_87, %c0_88] : memref<1x64xf32, #tpu.memory_space<vmem>>, vector<1x64xf32>
    %284 = vector.broadcast %283 : vector<1x64xf32> to vector<2x64xf32>
    %285 = arith.mulf %282, %284 : vector<2x64xf32>
    %cst_89 = arith.constant dense<0.000000e+00> : vector<2xf32>
    %286 = vector.multi_reduction <add>, %285, %cst_89 [1] : vector<2x64xf32> to vector<2xf32>
    %287 = vector.shape_cast %286 : vector<2xf32> to vector<2x1xf32>
    %c0_90 = arith.constant 0 : index
    %c0_91 = arith.constant 0 : index
    %288 = vector.load %arg5[%c0_90, %c0_91] : memref<1x1xf32, #tpu.memory_space<vmem>>, vector<1x1xf32>
    %289 = vector.broadcast %288 : vector<1x1xf32> to vector<2x1xf32>
    %290 = arith.addf %287, %289 : vector<2x1xf32>
    %c0_92 = arith.constant 0 : index
    %c0_93 = arith.constant 0 : index
    %291 = vector.load %arg6[%c0_92, %c0_93] : memref<2x1xf32, #tpu.memory_space<vmem>>, vector<2x1xf32>
    tpu.vector_store %arg6[%c0_92, %c0_93], %290 {strides = array<i32>} : memref<2x1xf32, #tpu.memory_space<vmem>>, vector<2x1xf32>,
    return
  }
}

</mosaic_0001>

<bundles_post_ra>
// kernel: rnn_forward.1
= control target key start
LH: loop header
LB: loop body
LE: loop exit
PB: predicated region body
PF: predicated region fallthrough
CT: control target
= control target key end

     0   :  { %s2786_s0 = inlined_call_operand.vmem [shape: f32[9,2,1], index: 0, kind: input, shape index: {}]   ;;  %s2787_s1 = inlined_call_operand.hbm [shape: f32[128,512], index: 1, kind: input, shape index: {}]   ;;  %s2788_s2 = inlined_call_operand.vmem [shape: f32[1,512], index: 2, kind: input, shape index: {}]   ;;  %s2789_s3 = inlined_call_operand.vmem [shape: f32[1,512], index: 3, kind: input, shape index: {}]   ;;  %s2790_s4 = inlined_call_operand.vmem [shape: f32[1,64], index: 4, kind: input, shape index: {}]   ;;  %s2791_s5 = inlined_call_operand.<no memory space> [shape: f32[1,1], index: 5, kind: input, shape index: {}]   ;;  %s2792_s6 = inlined_call_operand.vmem [shape: f32[2,1], index: 6, kind: output, shape index: {}]  }
   0x1   :  { %v11_v0 = vstv %s2791_s5 }
   0x2   :  { %12 = vst [vmem:[#allocation2] sm:$0x1] %v11_v0 }
   0x3   :  { %13 = vsyncpa [#allocation4], 0  ;;  %s2237_s23 = smov [#allocation3]   ;;  %s2213_s27 = scalar_lea.hbm %s2787_s1, 8192 }
   0x4   :  { %s21_s24 = sshll.u32 %s2237_s23, 4  ;;  %p2214_p0 = scmp.ne.s32.totalorder %s2787_s1, %s2213_s27  ;;  %s22_s24 = int_to_ptr.vmem [resolvable:$true] %s21_s24 }
   0x5   :  { %p2217_p1 = scmp.lt.u32.totalorder %s2213_s27, %s2787_s1 }
   0x7   :  { %p2219_p2 = pnand %p2217_p1, %p2214_p0 }
   0x9   :  { %2222 = shalt.err (!%p2219_p2)
}
   0xa   :  { %s2223_s5 = scalar_lea.vmem %s22_s24, 8192  ;;  %p2228_p4 = scmp.lt.s32.totalorder %s22_s24, %s22_s24 }
   0xb   :  { %p2224_p3 = scmp.ne.s32.totalorder %s22_s24, %s2223_s5  ;;  %p2229_p5 = scmp.lt.s32.totalorder %s2223_s5, %s2223_s5 }
   0xd   :  { %p2230_p6 = por %p2229_p5, %p2228_p4 }
   0xf   :  { %p2231_p7 = pnand %p2230_p6, %p2224_p3 }
  0x11   :  { %2234 = shalt.err (!%p2231_p7)
}
  0x12   :  { %s2238_s8 = smov 512   ;;  %s2239_s9 = smov 32  }
  0x13   :  { %27 = dma.hbm_to_vmem [thread:$0]  %s2787_s1, 8192, %s22_s24, [#allocation4], %s2238_s8, %s2238_s8, %s2239_s9  }
  0x14   :  { %2235 = dma.done.wait [#allocation4], 8192  }
  0x15   :  { %2236 = vsyncadd [#allocation4], 4294959104  ;;  %v2240_v1 = vmov 0   ;;  %v152_v2 = vld [vmem:[%s2786_s0] sm:$0x3]  ;;  %v40_v5 = vld [vmem:[#allocation3 + $0x8] sm:$0xff] }
  0x16   :  { %2121 = vset.pattern.permute.xlu0 %v2240_v1  ;;  %2122 = vset.pattern.permute.xlu1 %v2240_v1  ;;  %v1593_v3 = vld [vmem:[%s2786_s0 + $0x2] sm:$0x3]  ;;  %v1596_v4 = vld [vmem:[%s2786_s0 + $0x8] sm:$0x3]  ;;  %v42_v7 = vld [vmem:[#allocation3 + $0x18] sm:$0xff]  ;;  %v2241_v55 = vmov 0.0  }
  0x17   :  { %155 = vperm.xlu0 %2121, %v152_v2   ;;  %v44_v6 = vld [vmem:[#allocation3 + $0x28] sm:$0xff]  ;;  %v46_v9 = vld [vmem:[#allocation3 + $0x38] sm:$0xff]  ;;  %v39_v10 = vld [vmem:[#allocation3] sm:$0xff]  ;;  %262 = vmatprep.mubr.f32.mxu0 %v2241_v55  ;;  %s2242_s5 = smov 64   ;;  %vm1573_vm1 = vcmask 517120   ;;  %vm1585_vm2 = vcmask 1024  }
  0x18   :  { %v2302_v8 = vpack.c.bf16 %v44_v6, %v40_v5  ;;  %v43_v11 = vld [vmem:[#allocation3 + $0x20] sm:$0xff]  ;;  %v2304_v12 = vpack.c.bf16 %v46_v9, %v42_v7  ;;  %v41_v14 = vld [vmem:[#allocation3 + $0x10] sm:$0xff]  ;;  %v1598_v16 = vld [vmem:[%s2786_s0 + $0xc] sm:$0x3]  ;;  %333 = vmatprep.mubr.f32.mxu1 %v2241_v55 }
  0x19   :  { %v2306_v13 = vpack.c.bf16 %v43_v11, %v39_v10  ;;  %v45_v15 = vld [vmem:[#allocation3 + $0x30] sm:$0xff]  ;;  %v48_v18 = vld [vmem:[#allocation3 + $0x48] sm:$0xff]  ;;  %v50_v20 = vld [vmem:[#allocation3 + $0x58] sm:$0xff] }
  0x1a   :  { %1604 = vmatprep.subr.bf16.mxu0 %v2302_v8  ;;  %v2312_v17 = vpack.c.bf16 %v45_v15, %v41_v14  ;;  %1636 = vmatprep.subr.bf16.mxu1 %v2304_v12  ;;  %v52_v19 = vld [vmem:[#allocation3 + $0x68] sm:$0xff]  ;;  %v54_v22 = vld [vmem:[#allocation3 + $0x78] sm:$0xff]  ;;  %v47_v23 = vld [vmem:[#allocation3 + $0x40] sm:$0xff] }
  0x1b   :  { %187 = vperm.xlu0 %2121, %v1593_v3   ;;  %1606 = vmatpush1.bf16.msra.mxu0 %v2306_v13  ;;  %v2317_v21 = vpack.c.bf16 %v52_v19, %v48_v18  ;;  %v51_v24 = vld [vmem:[#allocation3 + $0x60] sm:$0xff]  ;;  %v2319_v25 = vpack.c.bf16 %v54_v22, %v50_v20  ;;  %v49_v27 = vld [vmem:[#allocation3 + $0x50] sm:$0xff]  ;;  %v56_v31 = vld [vmem:[#allocation3 + $0x88] sm:$0xff] }
  0x1c   :  { %1638 = vmatpush1.bf16.msra.mxu1 %v2312_v17  ;;  %v2321_v26 = vpack.c.bf16 %v51_v24, %v47_v23  ;;  %v53_v28 = vld [vmem:[#allocation3 + $0x70] sm:$0xff]  ;;  %v60_v32 = vld [vmem:[#allocation3 + $0xa8] sm:$0xff]  ;;  %v58_v33 = vld [vmem:[#allocation3 + $0x98] sm:$0xff] }
  0x1d   :  { %v1600_v29 = vld [vmem:[%s2786_s0 + $0x10] sm:$0x3]  ;;  %1608 = vmatprep.subr.bf16.mxu0 %v2317_v21  ;;  %v2327_v30 = vpack.c.bf16 %v53_v28, %v49_v27  ;;  %1640 = vmatprep.subr.bf16.mxu1 %v2319_v25  ;;  %v2332_v34 = vpack.c.bf16 %v60_v32, %v56_v31  ;;  %v62_v35 = vld [vmem:[#allocation3 + $0xb8] sm:$0xff]  ;;  %v55_v36 = vld [vmem:[#allocation3 + $0x80] sm:$0xff] }
  0x1e   :  { %v59_v37 = vld [vmem:[#allocation3 + $0xa0] sm:$0xff]  ;;  %v2334_v38 = vpack.c.bf16 %v62_v35, %v58_v33  ;;  %v57_v40 = vld [vmem:[#allocation3 + $0x90] sm:$0xff]  ;;  %v64_v43 = vld [vmem:[#allocation3 + $0xc8] sm:$0xff] }
  0x1f   :  { %703 = vperm.xlu0 %2121, %v1596_v4   ;;  %1610 = vmatpush1.bf16.msra.mxu0 %v2321_v26  ;;  %v2336_v39 = vpack.c.bf16 %v59_v37, %v55_v36  ;;  %v61_v41 = vld [vmem:[#allocation3 + $0xb0] sm:$0xff]  ;;  %v68_v44 = vld [vmem:[#allocation3 + $0xe8] sm:$0xff]  ;;  %v66_v45 = vld [vmem:[#allocation3 + $0xd8] sm:$0xff] }
  0x20   :  { %1642 = vmatpush1.bf16.msra.mxu1 %v2327_v30  ;;  %1612 = vmatprep.subr.bf16.mxu0 %v2332_v34  ;;  %v2339_v42 = vpack.c.bf16 %v61_v41, %v57_v40  ;;  %v2343_v46 = vpack.c.bf16 %v68_v44, %v64_v43  ;;  %v70_v47 = vld [vmem:[#allocation3 + $0xf8] sm:$0xff]  ;;  %v63_v48 = vld [vmem:[#allocation3 + $0xc0] sm:$0xff]  ;;  %v65_v52 = vld [vmem:[#allocation3 + $0xd0] sm:$0xff] }
  0x21   :  { %1644 = vmatprep.subr.bf16.mxu1 %v2334_v38  ;;  %v67_v49 = vld [vmem:[#allocation3 + $0xe0] sm:$0xff]  ;;  %v2346_v50 = vpack.c.bf16 %v70_v47, %v66_v45  ;;  %v69_v53 = vld [vmem:[#allocation3 + $0xf0] sm:$0xff]  ;;  %v72_v54 = vld [vmem:[#allocation3 + $0x108] sm:$0xff] }
  0x22   :  { %v2348_v51 = vpack.c.bf16 %v67_v49, %v63_v48  ;;  %v2352_v56 = vpack.c.bf16 %v69_v53, %v65_v52  ;;  %v76_v57 = vld [vmem:[#allocation3 + $0x128] sm:$0xff]  ;;  %v74_v58 = vld [vmem:[#allocation3 + $0x118] sm:$0xff]  ;;  %v71_v62 = vld [vmem:[#allocation3 + $0x100] sm:$0xff] }
  0x23   :  { %1047 = vperm.xlu0 %2121, %v1598_v16   ;;  %1614 = vmatpush1.bf16.msra.mxu0 %v2336_v39  ;;  %v78_v59 = vld [vmem:[#allocation3 + $0x138] sm:$0xff]  ;;  %v2356_v60 = vpack.c.bf16 %v76_v57, %v72_v54  ;;  %v75_v63 = vld [vmem:[#allocation3 + $0x120] sm:$0xff]  ;;  %v73_v0 = vld [vmem:[#allocation3 + $0x110] sm:$0xff]  ;;  %v105_v57 = vlaneseq }
  0x24   :  { %1646 = vmatpush1.bf16.msra.mxu1 %v2339_v42  ;;  %1616 = vmatprep.subr.bf16.mxu0 %v2343_v46  ;;  %v2358_v61 = vpack.c.bf16 %v78_v59, %v74_v58  ;;  %v2361_v1 = vpack.c.bf16 %v75_v63, %v71_v62  ;;  %v77_v2 = vld [vmem:[#allocation3 + $0x130] sm:$0xff]  ;;  %v80_v3 = vld [vmem:[#allocation3 + $0x148] sm:$0xff]  ;;  %v82_v7 = vld [vmem:[#allocation3 + $0x158] sm:$0xff] }
  0x25   :  { %1648 = vmatprep.subr.bf16.mxu1 %v2346_v50  ;;  %v84_v4 = vld [vmem:[#allocation3 + $0x168] sm:$0xff]  ;;  %v2365_v5 = vpack.c.bf16 %v77_v2, %v73_v0  ;;  %v86_v9 = vld [vmem:[#allocation3 + $0x178] sm:$0xff]  ;;  %v79_v10 = vld [vmem:[#allocation3 + $0x140] sm:$0xff]  ;;  %v106_v58 = vshrl.u32 %v105_v57, 7 }
  0x26   :  { %v2367_v6 = vpack.c.bf16 %v84_v4, %v80_v3  ;;  %v2370_v11 = vpack.c.bf16 %v86_v9, %v82_v7  ;;  %v83_v14 = vld [vmem:[#allocation3 + $0x160] sm:$0xff]  ;;  %v81_v15 = vld [vmem:[#allocation3 + $0x150] sm:$0xff]  ;;  %v88_v18 = vld [vmem:[#allocation3 + $0x188] sm:$0xff] }
  0x27   :  { %1391 = vperm.xlu0 %2121, %v1600_v29   ;;  %1618 = vmatpush1.bf16.msra.mxu0 %v2348_v51  ;;  %v85_v16 = vld [vmem:[#allocation3 + $0x170] sm:$0xff]  ;;  %v92_v19 = vld [vmem:[#allocation3 + $0x1a8] sm:$0xff]  ;;  %v90_v20 = vld [vmem:[#allocation3 + $0x198] sm:$0xff]  ;;  %v2373_v22 = vpack.c.bf16 %v83_v14, %v79_v10  ;;  %v107_v59 = vsub.s32 0, %v106_v58  ;;  %v111_v62 = vsub.s32 1, %v106_v58  ;;  %v115_v63 = vsub.s32 2, %v106_v58 }
  0x28   :  { %1650 = vmatpush1.bf16.msra.mxu1 %v2352_v56  ;;  %1620 = vmatprep.subr.bf16.mxu0 %v2356_v60  ;;  %v94_v23 = vld [vmem:[#allocation3 + $0x1b8] sm:$0xff]  ;;  %v2377_v24 = vpack.c.bf16 %v85_v16, %v81_v15  ;;  %v2379_v27 = vpack.c.bf16 %v92_v19, %v88_v18  ;;  %v87_v28 = vld [vmem:[#allocation3 + $0x180] sm:$0xff]  ;;  %v89_v31 = vld [vmem:[#allocation3 + $0x190] sm:$0xff]  ;;  %v119_v14 = vsub.s32 3, %v106_v58 }
  0x29   :  { %1652 = vmatprep.subr.bf16.mxu1 %v2358_v61  ;;  %v91_v29 = vld [vmem:[#allocation3 + $0x1a0] sm:$0xff]  ;;  %v2382_v32 = vpack.c.bf16 %v94_v23, %v90_v20  ;;  %v93_v33 = vld [vmem:[#allocation3 + $0x1b0] sm:$0xff]  ;;  %v96_v35 = vld [vmem:[#allocation3 + $0x1c8] sm:$0xff] }
  0x2a   :  { %v100_v36 = vld [vmem:[#allocation3 + $0x1e8] sm:$0xff]  ;;  %v98_v37 = vld [vmem:[#allocation3 + $0x1d8] sm:$0xff]  ;;  %v2385_v41 = vpack.c.bf16 %v91_v29, %v87_v28  ;;  %v2389_v43 = vpack.c.bf16 %v93_v33, %v89_v31  ;;  %v95_v45 = vld [vmem:[#allocation3 + $0x1c0] sm:$0xff] }
  0x2b   :  { %1622 = vmatpush1.bf16.msra.mxu0 %v2361_v1  ;;  %v102_v40 = vld [vmem:[#allocation3 + $0x1f8] sm:$0xff]  ;;  %v2391_v44 = vpack.c.bf16 %v100_v36, %v96_v35  ;;  %v99_v47 = vld [vmem:[#allocation3 + $0x1e0] sm:$0xff]  ;;  %v97_v49 = vld [vmem:[#allocation3 + $0x1d0] sm:$0xff] }
  0x2c   :  { %1654 = vmatpush1.bf16.msra.mxu1 %v2365_v5  ;;  %1624 = vmatprep.subr.bf16.mxu0 %v2367_v6  ;;  %v2394_v48 = vpack.c.bf16 %v102_v40, %v98_v37  ;;  %v101_v52 = vld [vmem:[#allocation3 + $0x1f0] sm:$0xff]  ;;  %v2397_v53 = vpack.c.bf16 %v99_v47, %v95_v45  ;;  %v103_v0 = vld [vmem:[%s2788_s2] sm:$0xf]  ;;  %v148_v40 = vand.u32 127, %v105_v57 }
  0x2d   :  { %1656 = vmatprep.subr.bf16.mxu1 %v2370_v11  ;;  %v2401_v54 = vpack.c.bf16 %v101_v52, %v97_v49  ;;  %v125_v2 = vld [vmem:[%s2789_s3] sm:$0xf]  ;;  %v2414_v3 = vrot.slane %v103_v0, %v107_v59  ;;  %v2416_v4 = vrot.slane %v103_v0, %v111_v62  ;;  %v2418_v7 = vrot.slane %v103_v0, %v115_v63 }
  0x2e   :  { %v2420_v9 = vrot.slane %v125_v2, %v107_v59  ;;  %v2422_v10 = vrot.slane %v125_v2, %v111_v62  ;;  %v2424_v16 = vrot.slane %v125_v2, %v115_v63  ;;  %v2431_v29 = vrot.slane %v103_v0, %v119_v14 }
  0x2f   :  { %1626 = vmatpush1.bf16.msra.mxu0 %v2373_v22  ;;  %v2434_v33 = vrot.slane %v125_v2, %v119_v14  ;;  %vm149_vm0 = vcmp.lt.s32.totalorder %v148_v40, 64 }
  0x30   :  { %1658 = vmatpush1.bf16.msra.mxu1 %v2377_v24  ;;  %1628 = vmatprep.subr.bf16.mxu0 %v2379_v27  ;;  %v1592_v0 = vsel %vm149_vm0, 1.0, %v2241_v55 }
  0x31   :  { %1660 = vmatprep.subr.bf16.mxu1 %v2382_v32 }
  0x33   :  { %1630 = vmatpush1.bf16.msra.mxu0 %v2385_v41 }
  0x34   :  { %1662 = vmatpush1.bf16.msra.mxu1 %v2389_v43  ;;  %1632 = vmatprep.subr.bf16.mxu0 %v2391_v44 }
  0x35   :  { %1664 = vmatprep.subr.bf16.mxu1 %v2394_v48 }
  0x37   :  { %1634 = vmatpush1.bf16.msra.mxu0 %v2397_v53 }
  0x38   :  { %1666 = vmatpush1.bf16.msra.mxu1 %v2401_v54  ;;  %1668 = vmatprep.subr.bf16.mxu0 %v2302_v8 }
  0x39   :  { %1700 = vmatprep.subr.bf16.mxu1 %v2304_v12 }
  0x96   :  { %v156_v15 = vpop.permute.xlu0 %155 }
  0x97   :  { %v158_v18 = vmul.f32 %v156_v15, %v2414_v3  ;;  %v159_v19 = vmul.f32 %v156_v15, %v2416_v4  ;;  %v160_v20 = vmul.f32 %v156_v15, %v2418_v7  ;;  %v161_v35 = vmul.f32 %v156_v15, %v2431_v29 }
  0x99   :  { %v162_v23 = vadd.f32 %v158_v18, %v2420_v9  ;;  %v163_v28 = vadd.f32 %v159_v19, %v2422_v10  ;;  %v164_v31 = vadd.f32 %v160_v20, %v2424_v16  ;;  %v165_v36 = vadd.f32 %v161_v35, %v2434_v33  ;;  %v1597_v35 = vld [vmem:[%s2786_s0 + $0xa] sm:$0x3] }
  0x9b   :  { %2123 = vtanh.f32 %v162_v23 }
  0x9c   :  { %2125 = vtanh.f32 %v163_v28  ;;  %v1594_v28 = vld [vmem:[%s2786_s0 + $0x4] sm:$0x3] }
  0x9d   :  { %2127 = vtanh.f32 %v164_v31  ;;  %359 = vperm.xlu1 %2122, %v1594_v28   ;;  %v1595_v31 = vld [vmem:[%s2786_s0 + $0x6] sm:$0x3] }
  0x9e   :  { %2129 = vtanh.f32 %v165_v36  ;;  %v1599_v36 = vld [vmem:[%s2786_s0 + $0xe] sm:$0x3] }
  0xa1   :  { %531 = vperm.xlu1 %2122, %v1595_v31  }
  0xa5   :  { %v2124_v37 = vpop.eup %2123  ;;  %875 = vperm.xlu1 %2122, %v1597_v35  }
  0xa6   :  { %v2126_v45 = vpop.eup %2125  ;;  %v170_v47 = vmul.f32 0.5, %v2124_v37  ;;  %v188_v37 = vpop.permute.xlu0 %187 }
  0xa7   :  { %v172_v49 = vmul.f32 0.5, %v2126_v45  ;;  %v2128_v58 = vpop.eup %2127  ;;  %v190_v40 = vmul.f32 %v188_v37, %v2414_v3  ;;  %v191_v45 = vmul.f32 %v188_v37, %v2416_v4 }
  0xa8   :  { %v171_v52 = vadd.f32 0.5, %v170_v47  ;;  %v2130_v15 = vpop.eup %2129  ;;  %v192_v47 = vmul.f32 %v188_v37, %v2418_v7 }
  0xa9   :  { %v173_v59 = vadd.f32 0.5, %v172_v49  ;;  %v174_v18 = vmul.f32 0.5, %v2130_v15  ;;  %1219 = vperm.xlu1 %2122, %v1599_v36   ;;  %v194_v49 = vadd.f32 %v190_v40, %v2420_v9 }
  0xaa   :  { %v177_v62 = vmul.f32 %v2128_v58, %v171_v52 }
  0xab   :  { %v176_v63 = vmul.f32 0.0, %v173_v59  ;;  %v175_v19 = vadd.f32 0.5, %v174_v18  ;;  %v195_v59 = vadd.f32 %v191_v45, %v2422_v10 }
  0xad   :  { %v178_v2 = vadd.f32 %v177_v62, %v176_v63  ;;  %v196_v63 = vadd.f32 %v192_v47, %v2424_v16 }
  0xaf   :  { %2131 = vtanh.f32 %v178_v2  ;;  %v2439_v14 = vmul.f32 %v1592_v0, %v178_v2 }
  0xb9   :  { %v2132_v57 = vpop.eup %2131 }
  0xba   :  { %v180_v20 = vmul.f32 %v2132_v57, %v175_v19  ;;  %v193_v19 = vmul.f32 %v188_v37, %v2431_v29 }
  0xbc   :  { %v181_v23 = vmul.f32 %v1592_v0, %v180_v20  ;;  %v197_v57 = vadd.f32 %v193_v19, %v2434_v33 }
  0xbe   :  { %263 = vmatmul.mubr.f32.vlgmr.msra.gmra.mrb[0].mxu0 %v181_v23  ;;  %334 = vmatmul.mubr.f32.vlgmr.msra.gmra.mrb[0].mxu1 %v181_v23 }
  0xbf   :  { %1670 = vmatpush1.bf16.msra.mxu0 %v2306_v13  ;;  %1702 = vmatpush1.bf16.msra.mxu1 %v2312_v17 }
  0xc0   :  { %1672 = vmatprep.subr.bf16.mxu0 %v2317_v21  ;;  %1704 = vmatprep.subr.bf16.mxu1 %v2319_v25 }
  0xc1   :  { %434 = vmatprep.mubr.f32.mxu0 %v2241_v55  ;;  %505 = vmatprep.mubr.f32.mxu1 %v2241_v55 }
  0xc3   :  { %1674 = vmatpush1.bf16.msra.mxu0 %v2321_v26  ;;  %1706 = vmatpush1.bf16.msra.mxu1 %v2327_v30 }
  0xc4   :  { %1676 = vmatprep.subr.bf16.mxu0 %v2332_v34  ;;  %1708 = vmatprep.subr.bf16.mxu1 %v2334_v38 }
  0xc7   :  { %1678 = vmatpush1.bf16.msra.mxu0 %v2336_v39  ;;  %1710 = vmatpush1.bf16.msra.mxu1 %v2339_v42 }
  0xc8   :  { %1680 = vmatprep.subr.bf16.mxu0 %v2343_v46  ;;  %1712 = vmatprep.subr.bf16.mxu1 %v2346_v50 }
  0xcb   :  { %1682 = vmatpush1.bf16.msra.mxu0 %v2348_v51  ;;  %1714 = vmatpush1.bf16.msra.mxu1 %v2352_v56 }
  0xcc   :  { %1684 = vmatprep.subr.bf16.mxu0 %v2356_v60  ;;  %1716 = vmatprep.subr.bf16.mxu1 %v2358_v61 }
  0xcf   :  { %1686 = vmatpush1.bf16.msra.mxu0 %v2361_v1  ;;  %1718 = vmatpush1.bf16.msra.mxu1 %v2365_v5 }
  0xd0   :  { %1688 = vmatprep.subr.bf16.mxu0 %v2367_v6  ;;  %1720 = vmatprep.subr.bf16.mxu1 %v2370_v11 }
  0xd3   :  { %1690 = vmatpush1.bf16.msra.mxu0 %v2373_v22  ;;  %1722 = vmatpush1.bf16.msra.mxu1 %v2377_v24 }
  0xd4   :  { %1692 = vmatprep.subr.bf16.mxu0 %v2379_v27  ;;  %1724 = vmatprep.subr.bf16.mxu1 %v2382_v32 }
  0xd7   :  { %1694 = vmatpush1.bf16.msra.mxu0 %v2385_v41  ;;  %1726 = vmatpush1.bf16.msra.mxu1 %v2389_v43 }
  0xd8   :  { %1696 = vmatprep.subr.bf16.mxu0 %v2391_v44  ;;  %1728 = vmatprep.subr.bf16.mxu1 %v2394_v48 }
  0xdb   :  { %1698 = vmatpush1.bf16.msra.mxu0 %v2397_v53  ;;  %1730 = vmatpush1.bf16.msra.mxu1 %v2401_v54 }
  0xdc   :  { %1732 = vmatprep.subr.bf16.mxu0 %v2302_v8  ;;  %1764 = vmatprep.subr.bf16.mxu1 %v2304_v12 }
 0x191   :  { %v264_v52 = vpop.f32.mrb[0].mxu0  ;;  %v335_v58 = vpop.f32.mrb[0].mxu1 }
 0x192   :  { %v265_v62 = vadd.f32 %v264_v52, %v194_v49  ;;  %v266_v0 = vpop.f32.mrb[1].mxu0  ;;  %v337_v2 = vpop.f32.mrb[1].mxu1  ;;  %v336_v18 = vadd.f32 %v335_v58, %v196_v63 }
 0x193   :  { %v267_v15 = vadd.f32 %v266_v0, %v195_v59  ;;  %v338_v20 = vadd.f32 %v337_v2, %v197_v57 }
 0x194   :  { %2133 = vtanh.f32 %v265_v62 }
 0x195   :  { %2135 = vtanh.f32 %v267_v15 }
 0x196   :  { %2137 = vtanh.f32 %v336_v18 }
 0x197   :  { %2139 = vtanh.f32 %v338_v20 }
 0x19e   :  { %v2134_v23 = vpop.eup %2133 }
 0x19f   :  { %v344_v28 = vmul.f32 0.5, %v2134_v23  ;;  %v2136_v31 = vpop.eup %2135 }
 0x1a0   :  { %v346_v36 = vmul.f32 0.5, %v2136_v31  ;;  %v2138_v40 = vpop.eup %2137 }
 0x1a1   :  { %v345_v35 = vadd.f32 0.5, %v344_v28  ;;  %v2140_v37 = vpop.eup %2139 }
 0x1a2   :  { %v347_v45 = vadd.f32 0.5, %v346_v36  ;;  %v348_v58 = vmul.f32 0.5, %v2140_v37 }
 0x1a3   :  { %v351_v47 = vmul.f32 %v2138_v40, %v345_v35 }
 0x1a4   :  { %v350_v49 = vmul.f32 %v347_v45, %v2439_v14  ;;  %v349_v59 = vadd.f32 0.5, %v348_v58  ;;  %v360_v14 = vpop.permute.xlu1 %359 }
 0x1a5   :  { %v362_v0 = vmul.f32 %v360_v14, %v2414_v3  ;;  %v363_v2 = vmul.f32 %v360_v14, %v2416_v4  ;;  %v364_v15 = vmul.f32 %v360_v14, %v2418_v7  ;;  %v365_v45 = vmul.f32 %v360_v14, %v2431_v29 }
 0x1a6   :  { %v2496_v52 = vadd.f32 %v351_v47, %v350_v49 }
 0x1a7   :  { %v366_v18 = vadd.f32 %v362_v0, %v2420_v9  ;;  %v367_v19 = vadd.f32 %v363_v2, %v2422_v10  ;;  %v368_v57 = vadd.f32 %v364_v15, %v2424_v16  ;;  %v369_v47 = vadd.f32 %v365_v45, %v2434_v33 }
 0x1a8   :  { %2141 = vtanh.f32 %v2496_v52 }
 0x1b2   :  { %v2142_v62 = vpop.eup %2141 }
 0x1b3   :  { %v354_v63 = vmul.f32 %v2142_v62, %v349_v59 }
 0x1b5   :  { %435 = vmatmul.mubr.f32.vlgmr.msra.gmra.mrb[2].mxu0 %v354_v63  ;;  %506 = vmatmul.mubr.f32.vlgmr.msra.gmra.mrb[2].mxu1 %v354_v63 }
 0x1b6   :  { %1734 = vmatpush1.bf16.msra.mxu0 %v2306_v13  ;;  %1766 = vmatpush1.bf16.msra.mxu1 %v2312_v17 }
 0x1b7   :  { %1736 = vmatprep.subr.bf16.mxu0 %v2317_v21  ;;  %1768 = vmatprep.subr.bf16.mxu1 %v2319_v25 }
 0x1b8   :  { %606 = vmatprep.mubr.f32.mxu0 %v2241_v55  ;;  %677 = vmatprep.mubr.f32.mxu1 %v2241_v55 }
 0x1ba   :  { %1738 = vmatpush1.bf16.msra.mxu0 %v2321_v26  ;;  %1770 = vmatpush1.bf16.msra.mxu1 %v2327_v30 }
 0x1bb   :  { %1740 = vmatprep.subr.bf16.mxu0 %v2332_v34  ;;  %1772 = vmatprep.subr.bf16.mxu1 %v2334_v38 }
 0x1be   :  { %1742 = vmatpush1.bf16.msra.mxu0 %v2336_v39  ;;  %1774 = vmatpush1.bf16.msra.mxu1 %v2339_v42 }
 0x1bf   :  { %1744 = vmatprep.subr.bf16.mxu0 %v2343_v46  ;;  %1776 = vmatprep.subr.bf16.mxu1 %v2346_v50 }
 0x1c2   :  { %1746 = vmatpush1.bf16.msra.mxu0 %v2348_v51  ;;  %1778 = vmatpush1.bf16.msra.mxu1 %v2352_v56 }
 0x1c3   :  { %1748 = vmatprep.subr.bf16.mxu0 %v2356_v60  ;;  %1780 = vmatprep.subr.bf16.mxu1 %v2358_v61 }
 0x1c6   :  { %1750 = vmatpush1.bf16.msra.mxu0 %v2361_v1  ;;  %1782 = vmatpush1.bf16.msra.mxu1 %v2365_v5 }
 0x1c7   :  { %1752 = vmatprep.subr.bf16.mxu0 %v2367_v6  ;;  %1784 = vmatprep.subr.bf16.mxu1 %v2370_v11 }
 0x1ca   :  { %1754 = vmatpush1.bf16.msra.mxu0 %v2373_v22  ;;  %1786 = vmatpush1.bf16.msra.mxu1 %v2377_v24 }
 0x1cb   :  { %1756 = vmatprep.subr.bf16.mxu0 %v2379_v27  ;;  %1788 = vmatprep.subr.bf16.mxu1 %v2382_v32 }
 0x1ce   :  { %1758 = vmatpush1.bf16.msra.mxu0 %v2385_v41  ;;  %1790 = vmatpush1.bf16.msra.mxu1 %v2389_v43 }
 0x1cf   :  { %1760 = vmatprep.subr.bf16.mxu0 %v2391_v44  ;;  %1792 = vmatprep.subr.bf16.mxu1 %v2394_v48 }
 0x1d2   :  { %1762 = vmatpush1.bf16.msra.mxu0 %v2397_v53  ;;  %1794 = vmatpush1.bf16.msra.mxu1 %v2401_v54 }
 0x1d3   :  { %1796 = vmatprep.subr.bf16.mxu0 %v2302_v8  ;;  %1828 = vmatprep.subr.bf16.mxu1 %v2304_v12 }
 0x288   :  { %v436_v20 = vpop.f32.mrb[2].mxu0  ;;  %v507_v23 = vpop.f32.mrb[2].mxu1 }
 0x289   :  { %v437_v28 = vadd.f32 %v436_v20, %v366_v18  ;;  %v438_v31 = vpop.f32.mrb[3].mxu0  ;;  %v509_v35 = vpop.f32.mrb[3].mxu1  ;;  %v508_v40 = vadd.f32 %v507_v23, %v368_v57 }
 0x28a   :  { %v439_v36 = vadd.f32 %v438_v31, %v367_v19  ;;  %v510_v49 = vadd.f32 %v509_v35, %v369_v47 }
 0x28b   :  { %2143 = vtanh.f32 %v437_v28 }
 0x28c   :  { %2145 = vtanh.f32 %v439_v36 }
 0x28d   :  { %2147 = vtanh.f32 %v508_v40 }
 0x28e   :  { %2149 = vtanh.f32 %v510_v49 }
 0x295   :  { %v2144_v37 = vpop.eup %2143 }
 0x296   :  { %v516_v58 = vmul.f32 0.5, %v2144_v37  ;;  %v2146_v59 = vpop.eup %2145 }
 0x297   :  { %v518_v63 = vmul.f32 0.5, %v2146_v59  ;;  %v2148_v0 = vpop.eup %2147 }
 0x298   :  { %v517_v62 = vadd.f32 0.5, %v516_v58  ;;  %v2150_v14 = vpop.eup %2149 }
 0x299   :  { %v519_v2 = vadd.f32 0.5, %v518_v63  ;;  %v520_v57 = vmul.f32 0.5, %v2150_v14 }
 0x29a   :  { %v523_v15 = vmul.f32 %v2148_v0, %v517_v62 }
 0x29b   :  { %v522_v18 = vmul.f32 %v519_v2, %v2496_v52  ;;  %v521_v20 = vadd.f32 0.5, %v520_v57  ;;  %v532_v52 = vpop.permute.xlu1 %531 }
 0x29c   :  { %v534_v31 = vmul.f32 %v532_v52, %v2414_v3  ;;  %v535_v35 = vmul.f32 %v532_v52, %v2416_v4  ;;  %v536_v36 = vmul.f32 %v532_v52, %v2418_v7  ;;  %v537_v2 = vmul.f32 %v532_v52, %v2431_v29 }
 0x29d   :  { %v2542_v19 = vadd.f32 %v523_v15, %v522_v18 }
 0x29e   :  { %v538_v40 = vadd.f32 %v534_v31, %v2420_v9  ;;  %v539_v49 = vadd.f32 %v535_v35, %v2422_v10  ;;  %v540_v58 = vadd.f32 %v536_v36, %v2424_v16  ;;  %v541_v15 = vadd.f32 %v537_v2, %v2434_v33 }
 0x29f   :  { %2151 = vtanh.f32 %v2542_v19 }
 0x2a9   :  { %v2152_v23 = vpop.eup %2151 }
 0x2aa   :  { %v526_v28 = vmul.f32 %v2152_v23, %v521_v20 }
 0x2ac   :  { %607 = vmatmul.mubr.f32.vlgmr.msra.gmra.mrb[4].mxu0 %v526_v28  ;;  %678 = vmatmul.mubr.f32.vlgmr.msra.gmra.mrb[4].mxu1 %v526_v28 }
 0x2ad   :  { %1798 = vmatpush1.bf16.msra.mxu0 %v2306_v13  ;;  %1830 = vmatpush1.bf16.msra.mxu1 %v2312_v17 }
 0x2ae   :  { %1800 = vmatprep.subr.bf16.mxu0 %v2317_v21  ;;  %1832 = vmatprep.subr.bf16.mxu1 %v2319_v25 }
 0x2af   :  { %778 = vmatprep.mubr.f32.mxu0 %v2241_v55  ;;  %849 = vmatprep.mubr.f32.mxu1 %v2241_v55 }
 0x2b1   :  { %1802 = vmatpush1.bf16.msra.mxu0 %v2321_v26  ;;  %1834 = vmatpush1.bf16.msra.mxu1 %v2327_v30 }
 0x2b2   :  { %1804 = vmatprep.subr.bf16.mxu0 %v2332_v34  ;;  %1836 = vmatprep.subr.bf16.mxu1 %v2334_v38 }
 0x2b5   :  { %1806 = vmatpush1.bf16.msra.mxu0 %v2336_v39  ;;  %1838 = vmatpush1.bf16.msra.mxu1 %v2339_v42 }
 0x2b6   :  { %1808 = vmatprep.subr.bf16.mxu0 %v2343_v46  ;;  %1840 = vmatprep.subr.bf16.mxu1 %v2346_v50 }
 0x2b9   :  { %1810 = vmatpush1.bf16.msra.mxu0 %v2348_v51  ;;  %1842 = vmatpush1.bf16.msra.mxu1 %v2352_v56 }
 0x2ba   :  { %1812 = vmatprep.subr.bf16.mxu0 %v2356_v60  ;;  %1844 = vmatprep.subr.bf16.mxu1 %v2358_v61 }
 0x2bd   :  { %1814 = vmatpush1.bf16.msra.mxu0 %v2361_v1  ;;  %1846 = vmatpush1.bf16.msra.mxu1 %v2365_v5 }
 0x2be   :  { %1816 = vmatprep.subr.bf16.mxu0 %v2367_v6  ;;  %1848 = vmatprep.subr.bf16.mxu1 %v2370_v11 }
 0x2c1   :  { %1818 = vmatpush1.bf16.msra.mxu0 %v2373_v22  ;;  %1850 = vmatpush1.bf16.msra.mxu1 %v2377_v24 }
 0x2c2   :  { %1820 = vmatprep.subr.bf16.mxu0 %v2379_v27  ;;  %1852 = vmatprep.subr.bf16.mxu1 %v2382_v32 }
 0x2c5   :  { %1822 = vmatpush1.bf16.msra.mxu0 %v2385_v41  ;;  %1854 = vmatpush1.bf16.msra.mxu1 %v2389_v43 }
 0x2c6   :  { %1824 = vmatprep.subr.bf16.mxu0 %v2391_v44  ;;  %1856 = vmatprep.subr.bf16.mxu1 %v2394_v48 }
 0x2c9   :  { %1826 = vmatpush1.bf16.msra.mxu0 %v2397_v53  ;;  %1858 = vmatpush1.bf16.msra.mxu1 %v2401_v54 }
 0x2ca   :  { %1860 = vmatprep.subr.bf16.mxu0 %v2302_v8  ;;  %1892 = vmatprep.subr.bf16.mxu1 %v2304_v12 }
 0x37f   :  { %v608_v45 = vpop.f32.mrb[4].mxu0  ;;  %v679_v47 = vpop.f32.mrb[4].mxu1 }
 0x380   :  { %v609_v37 = vadd.f32 %v608_v45, %v538_v40  ;;  %v610_v59 = vpop.f32.mrb[5].mxu0  ;;  %v681_v62 = vpop.f32.mrb[5].mxu1  ;;  %v680_v0 = vadd.f32 %v679_v47, %v540_v58 }
 0x381   :  { %v611_v63 = vadd.f32 %v610_v59, %v539_v49  ;;  %v682_v18 = vadd.f32 %v681_v62, %v541_v15 }
 0x382   :  { %2153 = vtanh.f32 %v609_v37 }
 0x383   :  { %2155 = vtanh.f32 %v611_v63 }
 0x384   :  { %2157 = vtanh.f32 %v680_v0 }
 0x385   :  { %2159 = vtanh.f32 %v682_v18 }
 0x38c   :  { %v2154_v14 = vpop.eup %2153 }
 0x38d   :  { %v688_v57 = vmul.f32 0.5, %v2154_v14  ;;  %v2156_v20 = vpop.eup %2155 }
 0x38e   :  { %v690_v28 = vmul.f32 0.5, %v2156_v20  ;;  %v2158_v31 = vpop.eup %2157 }
 0x38f   :  { %v689_v23 = vadd.f32 0.5, %v688_v57  ;;  %v2160_v52 = vpop.eup %2159 }
 0x390   :  { %v691_v35 = vadd.f32 0.5, %v690_v28  ;;  %v692_v47 = vmul.f32 0.5, %v2160_v52 }
 0x391   :  { %v695_v36 = vmul.f32 %v2158_v31, %v689_v23 }
 0x392   :  { %v694_v40 = vmul.f32 %v691_v35, %v2542_v19  ;;  %v693_v49 = vadd.f32 0.5, %v692_v47  ;;  %v704_v19 = vpop.permute.xlu0 %703 }
 0x393   :  { %v706_v59 = vmul.f32 %v704_v19, %v2414_v3  ;;  %v707_v62 = vmul.f32 %v704_v19, %v2416_v4  ;;  %v708_v63 = vmul.f32 %v704_v19, %v2418_v7  ;;  %v709_v35 = vmul.f32 %v704_v19, %v2431_v29 }
 0x394   :  { %v2588_v45 = vadd.f32 %v695_v36, %v694_v40 }
 0x395   :  { %v710_v0 = vadd.f32 %v706_v59, %v2420_v9  ;;  %v711_v18 = vadd.f32 %v707_v62, %v2422_v10  ;;  %v712_v57 = vadd.f32 %v708_v63, %v2424_v16  ;;  %v713_v36 = vadd.f32 %v709_v35, %v2434_v33 }
 0x396   :  { %2161 = vtanh.f32 %v2588_v45 }
 0x3a0   :  { %v2162_v37 = vpop.eup %2161 }
 0x3a1   :  { %v698_v58 = vmul.f32 %v2162_v37, %v693_v49 }
 0x3a3   :  { %779 = vmatmul.mubr.f32.vlgmr.msra.gmra.mrb[6].mxu0 %v698_v58  ;;  %850 = vmatmul.mubr.f32.vlgmr.msra.gmra.mrb[6].mxu1 %v698_v58 }
 0x3a4   :  { %1862 = vmatpush1.bf16.msra.mxu0 %v2306_v13  ;;  %1894 = vmatpush1.bf16.msra.mxu1 %v2312_v17 }
 0x3a5   :  { %1864 = vmatprep.subr.bf16.mxu0 %v2317_v21  ;;  %1896 = vmatprep.subr.bf16.mxu1 %v2319_v25 }
 0x3a6   :  { %950 = vmatprep.mubr.f32.mxu0 %v2241_v55  ;;  %1021 = vmatprep.mubr.f32.mxu1 %v2241_v55 }
 0x3a8   :  { %1866 = vmatpush1.bf16.msra.mxu0 %v2321_v26  ;;  %1898 = vmatpush1.bf16.msra.mxu1 %v2327_v30 }
 0x3a9   :  { %1868 = vmatprep.subr.bf16.mxu0 %v2332_v34  ;;  %1900 = vmatprep.subr.bf16.mxu1 %v2334_v38 }
 0x3ac   :  { %1870 = vmatpush1.bf16.msra.mxu0 %v2336_v39  ;;  %1902 = vmatpush1.bf16.msra.mxu1 %v2339_v42 }
 0x3ad   :  { %1872 = vmatprep.subr.bf16.mxu0 %v2343_v46  ;;  %1904 = vmatprep.subr.bf16.mxu1 %v2346_v50 }
 0x3b0   :  { %1874 = vmatpush1.bf16.msra.mxu0 %v2348_v51  ;;  %1906 = vmatpush1.bf16.msra.mxu1 %v2352_v56 }
 0x3b1   :  { %1876 = vmatprep.subr.bf16.mxu0 %v2356_v60  ;;  %1908 = vmatprep.subr.bf16.mxu1 %v2358_v61 }
 0x3b4   :  { %1878 = vmatpush1.bf16.msra.mxu0 %v2361_v1  ;;  %1910 = vmatpush1.bf16.msra.mxu1 %v2365_v5 }
 0x3b5   :  { %1880 = vmatprep.subr.bf16.mxu0 %v2367_v6  ;;  %1912 = vmatprep.subr.bf16.mxu1 %v2370_v11 }
 0x3b8   :  { %1882 = vmatpush1.bf16.msra.mxu0 %v2373_v22  ;;  %1914 = vmatpush1.bf16.msra.mxu1 %v2377_v24 }
 0x3b9   :  { %1884 = vmatprep.subr.bf16.mxu0 %v2379_v27  ;;  %1916 = vmatprep.subr.bf16.mxu1 %v2382_v32 }
 0x3bc   :  { %1886 = vmatpush1.bf16.msra.mxu0 %v2385_v41  ;;  %1918 = vmatpush1.bf16.msra.mxu1 %v2389_v43 }
 0x3bd   :  { %1888 = vmatprep.subr.bf16.mxu0 %v2391_v44  ;;  %1920 = vmatprep.subr.bf16.mxu1 %v2394_v48 }
 0x3c0   :  { %1890 = vmatpush1.bf16.msra.mxu0 %v2397_v53  ;;  %1922 = vmatpush1.bf16.msra.mxu1 %v2401_v54 }
 0x3c1   :  { %1924 = vmatprep.subr.bf16.mxu0 %v2302_v8  ;;  %1956 = vmatprep.subr.bf16.mxu1 %v2304_v12 }
 0x476   :  { %v780_v2 = vpop.f32.mrb[6].mxu0  ;;  %v851_v15 = vpop.f32.mrb[6].mxu1 }
 0x477   :  { %v781_v14 = vadd.f32 %v780_v2, %v710_v0  ;;  %v782_v20 = vpop.f32.mrb[7].mxu0  ;;  %v853_v23 = vpop.f32.mrb[7].mxu1  ;;  %v852_v31 = vadd.f32 %v851_v15, %v712_v57 }
 0x478   :  { %v783_v28 = vadd.f32 %v782_v20, %v711_v18  ;;  %v854_v40 = vadd.f32 %v853_v23, %v713_v36 }
 0x479   :  { %2163 = vtanh.f32 %v781_v14 }
 0x47a   :  { %2165 = vtanh.f32 %v783_v28 }
 0x47b   :  { %2167 = vtanh.f32 %v852_v31 }
 0x47c   :  { %2169 = vtanh.f32 %v854_v40 }
 0x483   :  { %v2164_v52 = vpop.eup %2163 }
 0x484   :  { %v860_v47 = vmul.f32 0.5, %v2164_v52  ;;  %v2166_v49 = vpop.eup %2165 }
 0x485   :  { %v862_v58 = vmul.f32 0.5, %v2166_v49  ;;  %v2168_v59 = vpop.eup %2167 }
 0x486   :  { %v861_v37 = vadd.f32 0.5, %v860_v47  ;;  %v2170_v19 = vpop.eup %2169 }
 0x487   :  { %v863_v62 = vadd.f32 0.5, %v862_v58  ;;  %v864_v15 = vmul.f32 0.5, %v2170_v19 }
 0x488   :  { %v867_v63 = vmul.f32 %v2168_v59, %v861_v37 }
 0x489   :  { %v866_v0 = vmul.f32 %v863_v62, %v2588_v45  ;;  %v865_v18 = vadd.f32 0.5, %v864_v15  ;;  %v876_v45 = vpop.permute.xlu1 %875 }
 0x48a   :  { %v878_v20 = vmul.f32 %v876_v45, %v2414_v3  ;;  %v879_v23 = vmul.f32 %v876_v45, %v2416_v4  ;;  %v880_v28 = vmul.f32 %v876_v45, %v2418_v7  ;;  %v881_v62 = vmul.f32 %v876_v45, %v2431_v29 }
 0x48b   :  { %v2634_v2 = vadd.f32 %v867_v63, %v866_v0 }
 0x48c   :  { %v882_v31 = vadd.f32 %v878_v20, %v2420_v9  ;;  %v883_v40 = vadd.f32 %v879_v23, %v2422_v10  ;;  %v884_v47 = vadd.f32 %v880_v28, %v2424_v16  ;;  %v885_v63 = vadd.f32 %v881_v62, %v2434_v33 }
 0x48d   :  { %2171 = vtanh.f32 %v2634_v2 }
 0x497   :  { %v2172_v14 = vpop.eup %2171 }
 0x498   :  { %v870_v57 = vmul.f32 %v2172_v14, %v865_v18 }
 0x49a   :  { %951 = vmatmul.mubr.f32.vlgmr.msra.gmra.mrb[8].mxu0 %v870_v57  ;;  %1022 = vmatmul.mubr.f32.vlgmr.msra.gmra.mrb[8].mxu1 %v870_v57 }
 0x49b   :  { %1926 = vmatpush1.bf16.msra.mxu0 %v2306_v13  ;;  %1958 = vmatpush1.bf16.msra.mxu1 %v2312_v17 }
 0x49c   :  { %1928 = vmatprep.subr.bf16.mxu0 %v2317_v21  ;;  %1960 = vmatprep.subr.bf16.mxu1 %v2319_v25 }
 0x49d   :  { %1122 = vmatprep.mubr.f32.mxu0 %v2241_v55  ;;  %1193 = vmatprep.mubr.f32.mxu1 %v2241_v55 }
 0x49f   :  { %1930 = vmatpush1.bf16.msra.mxu0 %v2321_v26  ;;  %1962 = vmatpush1.bf16.msra.mxu1 %v2327_v30 }
 0x4a0   :  { %1932 = vmatprep.subr.bf16.mxu0 %v2332_v34  ;;  %1964 = vmatprep.subr.bf16.mxu1 %v2334_v38 }
 0x4a3   :  { %1934 = vmatpush1.bf16.msra.mxu0 %v2336_v39  ;;  %1966 = vmatpush1.bf16.msra.mxu1 %v2339_v42 }
 0x4a4   :  { %1936 = vmatprep.subr.bf16.mxu0 %v2343_v46  ;;  %1968 = vmatprep.subr.bf16.mxu1 %v2346_v50 }
 0x4a7   :  { %1938 = vmatpush1.bf16.msra.mxu0 %v2348_v51  ;;  %1970 = vmatpush1.bf16.msra.mxu1 %v2352_v56 }
 0x4a8   :  { %1940 = vmatprep.subr.bf16.mxu0 %v2356_v60  ;;  %1972 = vmatprep.subr.bf16.mxu1 %v2358_v61 }
 0x4ab   :  { %1942 = vmatpush1.bf16.msra.mxu0 %v2361_v1  ;;  %1974 = vmatpush1.bf16.msra.mxu1 %v2365_v5 }
 0x4ac   :  { %1944 = vmatprep.subr.bf16.mxu0 %v2367_v6  ;;  %1976 = vmatprep.subr.bf16.mxu1 %v2370_v11 }
 0x4af   :  { %1946 = vmatpush1.bf16.msra.mxu0 %v2373_v22  ;;  %1978 = vmatpush1.bf16.msra.mxu1 %v2377_v24 }
 0x4b0   :  { %1948 = vmatprep.subr.bf16.mxu0 %v2379_v27  ;;  %1980 = vmatprep.subr.bf16.mxu1 %v2382_v32 }
 0x4b3   :  { %1950 = vmatpush1.bf16.msra.mxu0 %v2385_v41  ;;  %1982 = vmatpush1.bf16.msra.mxu1 %v2389_v43 }
 0x4b4   :  { %1952 = vmatprep.subr.bf16.mxu0 %v2391_v44  ;;  %1984 = vmatprep.subr.bf16.mxu1 %v2394_v48 }
 0x4b7   :  { %1954 = vmatpush1.bf16.msra.mxu0 %v2397_v53  ;;  %1986 = vmatpush1.bf16.msra.mxu1 %v2401_v54 }
 0x4b8   :  { %1988 = vmatprep.subr.bf16.mxu0 %v2302_v8  ;;  %2020 = vmatprep.subr.bf16.mxu1 %v2304_v12 }
 0x56d   :  { %v952_v35 = vpop.f32.mrb[8].mxu0  ;;  %v1023_v36 = vpop.f32.mrb[8].mxu1 }
 0x56e   :  { %v953_v52 = vadd.f32 %v952_v35, %v882_v31  ;;  %v954_v49 = vpop.f32.mrb[9].mxu0  ;;  %v1025_v37 = vpop.f32.mrb[9].mxu1  ;;  %v1024_v59 = vadd.f32 %v1023_v36, %v884_v47 }
 0x56f   :  { %v955_v58 = vadd.f32 %v954_v49, %v883_v40  ;;  %v1026_v0 = vadd.f32 %v1025_v37, %v885_v63 }
 0x570   :  { %2173 = vtanh.f32 %v953_v52 }
 0x571   :  { %2175 = vtanh.f32 %v955_v58 }
 0x572   :  { %2177 = vtanh.f32 %v1024_v59 }
 0x573   :  { %2179 = vtanh.f32 %v1026_v0 }
 0x57a   :  { %v2174_v19 = vpop.eup %2173 }
 0x57b   :  { %v1032_v15 = vmul.f32 0.5, %v2174_v19  ;;  %v2176_v18 = vpop.eup %2175 }
 0x57c   :  { %v1034_v57 = vmul.f32 0.5, %v2176_v18  ;;  %v2178_v20 = vpop.eup %2177 }
 0x57d   :  { %v1033_v14 = vadd.f32 0.5, %v1032_v15  ;;  %v2180_v45 = vpop.eup %2179 }
 0x57e   :  { %v1035_v23 = vadd.f32 0.5, %v1034_v57  ;;  %v1036_v36 = vmul.f32 0.5, %v2180_v45 }
 0x57f   :  { %v1039_v28 = vmul.f32 %v2178_v20, %v1033_v14 }
 0x580   :  { %v1038_v31 = vmul.f32 %v1035_v23, %v2634_v2  ;;  %v1037_v40 = vadd.f32 0.5, %v1036_v36  ;;  %v1048_v2 = vpop.permute.xlu0 %1047 }
 0x581   :  { %v1050_v49 = vmul.f32 %v1048_v2, %v2414_v3  ;;  %v1051_v37 = vmul.f32 %v1048_v2, %v2416_v4  ;;  %v1052_v58 = vmul.f32 %v1048_v2, %v2418_v7  ;;  %v1053_v57 = vmul.f32 %v1048_v2, %v2431_v29 }
 0x582   :  { %v2680_v35 = vadd.f32 %v1039_v28, %v1038_v31 }
 0x583   :  { %v1054_v59 = vadd.f32 %v1050_v49, %v2420_v9  ;;  %v1055_v0 = vadd.f32 %v1051_v37, %v2422_v10  ;;  %v1056_v15 = vadd.f32 %v1052_v58, %v2424_v16  ;;  %v1057_v20 = vadd.f32 %v1053_v57, %v2434_v33 }
 0x584   :  { %2181 = vtanh.f32 %v2680_v35 }
 0x58e   :  { %v2182_v52 = vpop.eup %2181 }
 0x58f   :  { %v1042_v47 = vmul.f32 %v2182_v52, %v1037_v40 }
 0x591   :  { %1123 = vmatmul.mubr.f32.vlgmr.msra.gmra.mrb[10].mxu0 %v1042_v47  ;;  %1194 = vmatmul.mubr.f32.vlgmr.msra.gmra.mrb[10].mxu1 %v1042_v47 }
 0x592   :  { %1990 = vmatpush1.bf16.msra.mxu0 %v2306_v13  ;;  %2022 = vmatpush1.bf16.msra.mxu1 %v2312_v17 }
 0x593   :  { %1992 = vmatprep.subr.bf16.mxu0 %v2317_v21  ;;  %2024 = vmatprep.subr.bf16.mxu1 %v2319_v25 }
 0x594   :  { %1294 = vmatprep.mubr.f32.mxu0 %v2241_v55  ;;  %1365 = vmatprep.mubr.f32.mxu1 %v2241_v55 }
 0x596   :  { %1994 = vmatpush1.bf16.msra.mxu0 %v2321_v26  ;;  %2026 = vmatpush1.bf16.msra.mxu1 %v2327_v30 }
 0x597   :  { %1996 = vmatprep.subr.bf16.mxu0 %v2332_v34  ;;  %2028 = vmatprep.subr.bf16.mxu1 %v2334_v38 }
 0x59a   :  { %1998 = vmatpush1.bf16.msra.mxu0 %v2336_v39  ;;  %2030 = vmatpush1.bf16.msra.mxu1 %v2339_v42 }
 0x59b   :  { %2000 = vmatprep.subr.bf16.mxu0 %v2343_v46  ;;  %2032 = vmatprep.subr.bf16.mxu1 %v2346_v50 }
 0x59e   :  { %2002 = vmatpush1.bf16.msra.mxu0 %v2348_v51  ;;  %2034 = vmatpush1.bf16.msra.mxu1 %v2352_v56 }
 0x59f   :  { %2004 = vmatprep.subr.bf16.mxu0 %v2356_v60  ;;  %2036 = vmatprep.subr.bf16.mxu1 %v2358_v61 }
 0x5a2   :  { %2006 = vmatpush1.bf16.msra.mxu0 %v2361_v1  ;;  %2038 = vmatpush1.bf16.msra.mxu1 %v2365_v5 }
 0x5a3   :  { %2008 = vmatprep.subr.bf16.mxu0 %v2367_v6  ;;  %2040 = vmatprep.subr.bf16.mxu1 %v2370_v11 }
 0x5a6   :  { %2010 = vmatpush1.bf16.msra.mxu0 %v2373_v22  ;;  %2042 = vmatpush1.bf16.msra.mxu1 %v2377_v24 }
 0x5a7   :  { %2012 = vmatprep.subr.bf16.mxu0 %v2379_v27  ;;  %2044 = vmatprep.subr.bf16.mxu1 %v2382_v32 }
 0x5aa   :  { %2014 = vmatpush1.bf16.msra.mxu0 %v2385_v41  ;;  %2046 = vmatpush1.bf16.msra.mxu1 %v2389_v43 }
 0x5ab   :  { %2016 = vmatprep.subr.bf16.mxu0 %v2391_v44  ;;  %2048 = vmatprep.subr.bf16.mxu1 %v2394_v48 }
 0x5ae   :  { %2018 = vmatpush1.bf16.msra.mxu0 %v2397_v53  ;;  %2050 = vmatpush1.bf16.msra.mxu1 %v2401_v54 }
 0x5af   :  { %2052 = vmatprep.subr.bf16.mxu0 %v2302_v8  ;;  %2084 = vmatprep.subr.bf16.mxu1 %v2304_v12 }
 0x664   :  { %v1124_v62 = vpop.f32.mrb[10].mxu0  ;;  %v1195_v63 = vpop.f32.mrb[10].mxu1 }
 0x665   :  { %v1125_v19 = vadd.f32 %v1124_v62, %v1054_v59  ;;  %v1126_v18 = vpop.f32.mrb[11].mxu0  ;;  %v1197_v8 = vpop.f32.mrb[11].mxu1  ;;  %v1196_v12 = vadd.f32 %v1195_v63, %v1056_v15 }
 0x666   :  { %v1127_v14 = vadd.f32 %v1126_v18, %v1055_v0  ;;  %v1198_v23 = vadd.f32 %v1197_v8, %v1057_v20  ;;  %v1392_v15 = vpop.permute.xlu0 %1391 }
 0x667   :  { %2183 = vtanh.f32 %v1125_v19  ;;  %v1394_v18 = vmul.f32 %v1392_v15, %v2414_v3  ;;  %v1395_v8 = vmul.f32 %v1392_v15, %v2416_v4 }
 0x668   :  { %2185 = vtanh.f32 %v1127_v14  ;;  %v1396_v14 = vmul.f32 %v1392_v15, %v2418_v7 }
 0x669   :  { %2187 = vtanh.f32 %v1196_v12  ;;  %v1398_v12 = vadd.f32 %v1394_v18, %v2420_v9 }
 0x66a   :  { %2189 = vtanh.f32 %v1198_v23  ;;  %v1399_v23 = vadd.f32 %v1395_v8, %v2422_v10 }
 0x671   :  { %v2184_v28 = vpop.eup %2183 }
 0x672   :  { %v1204_v31 = vmul.f32 0.5, %v2184_v28  ;;  %v2186_v45 = vpop.eup %2185 }
 0x673   :  { %v1206_v40 = vmul.f32 0.5, %v2186_v45  ;;  %v2188_v52 = vpop.eup %2187 }
 0x674   :  { %v1205_v36 = vadd.f32 0.5, %v1204_v31  ;;  %v2190_v2 = vpop.eup %2189  ;;  %v1400_v31 = vadd.f32 %v1396_v14, %v2424_v16 }
 0x675   :  { %v1207_v47 = vadd.f32 0.5, %v1206_v40  ;;  %v1208_v59 = vmul.f32 0.5, %v2190_v2 }
 0x676   :  { %v1211_v49 = vmul.f32 %v2188_v52, %v1205_v36 }
 0x677   :  { %v1210_v37 = vmul.f32 %v1207_v47, %v2680_v35  ;;  %v1209_v62 = vadd.f32 0.5, %v1208_v59 }
 0x679   :  { %v2726_v58 = vadd.f32 %v1211_v49, %v1210_v37 }
 0x67b   :  { %2191 = vtanh.f32 %v2726_v58 }
 0x685   :  { %v2192_v63 = vpop.eup %2191 }
 0x686   :  { %v1214_v0 = vmul.f32 %v2192_v63, %v1209_v62 }
 0x688   :  { %1295 = vmatmul.mubr.f32.vlgmr.msra.gmra.mrb[12].mxu0 %v1214_v0  ;;  %1366 = vmatmul.mubr.f32.vlgmr.msra.gmra.mrb[12].mxu1 %v1214_v0 }
 0x689   :  { %2054 = vmatpush1.bf16.msra.mxu0 %v2306_v13  ;;  %2086 = vmatpush1.bf16.msra.mxu1 %v2312_v17  ;;  %v1601_v13 = vld [vmem:[%s2790_s4] ss:$0 sm:$0xff]  ;;  %v1220_v17 = vpop.permute.xlu1 %1219 }
 0x68a   :  { %2056 = vmatprep.subr.bf16.mxu0 %v2317_v21  ;;  %2088 = vmatprep.subr.bf16.mxu1 %v2319_v25  ;;  %v1222_v21 = vmul.f32 %v1220_v17, %v2414_v3  ;;  %v1223_v25 = vmul.f32 %v1220_v17, %v2416_v4  ;;  %v1397_v3 = vmul.f32 %v1392_v15, %v2431_v29 }
 0x68b   :  { %1466 = vmatprep.mubr.f32.mxu0 %v2241_v55  ;;  %1537 = vmatprep.mubr.f32.mxu1 %v2241_v55 }
 0x68c   :  { %1565 = vrot.lane.b32.xlu1 %v1601_v13, %s2242_s5  ;;  %v1401_v4 = vadd.f32 %v1397_v3, %v2434_v33 }
 0x68d   :  { %2058 = vmatpush1.bf16.msra.mxu0 %v2321_v26  ;;  %2090 = vmatpush1.bf16.msra.mxu1 %v2327_v30  ;;  %v1224_v26 = vmul.f32 %v1220_v17, %v2418_v7  ;;  %v1226_v30 = vadd.f32 %v1222_v21, %v2420_v9 }
 0x68e   :  { %2060 = vmatprep.subr.bf16.mxu0 %v2332_v34  ;;  %2092 = vmatprep.subr.bf16.mxu1 %v2334_v38 }
 0x691   :  { %2062 = vmatpush1.bf16.msra.mxu0 %v2336_v39  ;;  %2094 = vmatpush1.bf16.msra.mxu1 %v2339_v42  ;;  %v1227_v39 = vadd.f32 %v1223_v25, %v2422_v10 }
 0x692   :  { %2064 = vmatprep.subr.bf16.mxu0 %v2343_v46  ;;  %2096 = vmatprep.subr.bf16.mxu1 %v2346_v50  ;;  %v1228_v46 = vadd.f32 %v1224_v26, %v2424_v16 }
 0x695   :  { %2066 = vmatpush1.bf16.msra.mxu0 %v2348_v51  ;;  %2098 = vmatpush1.bf16.msra.mxu1 %v2352_v56 }
 0x696   :  { %2068 = vmatprep.subr.bf16.mxu0 %v2356_v60  ;;  %2100 = vmatprep.subr.bf16.mxu1 %v2358_v61  ;;  %v1225_v60 = vmul.f32 %v1220_v17, %v2431_v29 }
 0x698   :  { %v1229_v61 = vadd.f32 %v1225_v60, %v2434_v33 }
 0x699   :  { %2070 = vmatpush1.bf16.msra.mxu0 %v2361_v1  ;;  %2102 = vmatpush1.bf16.msra.mxu1 %v2365_v5 }
 0x69a   :  { %2072 = vmatprep.subr.bf16.mxu0 %v2367_v6  ;;  %2104 = vmatprep.subr.bf16.mxu1 %v2370_v11 }
 0x69d   :  { %2074 = vmatpush1.bf16.msra.mxu0 %v2373_v22  ;;  %2106 = vmatpush1.bf16.msra.mxu1 %v2377_v24 }
 0x69e   :  { %2076 = vmatprep.subr.bf16.mxu0 %v2379_v27  ;;  %2108 = vmatprep.subr.bf16.mxu1 %v2382_v32 }
 0x6a1   :  { %2078 = vmatpush1.bf16.msra.mxu0 %v2385_v41  ;;  %2110 = vmatpush1.bf16.msra.mxu1 %v2389_v43 }
 0x6a2   :  { %2080 = vmatprep.subr.bf16.mxu0 %v2391_v44  ;;  %2112 = vmatprep.subr.bf16.mxu1 %v2394_v48 }
 0x6a5   :  { %2082 = vmatpush1.bf16.msra.mxu0 %v2397_v53  ;;  %2114 = vmatpush1.bf16.msra.mxu1 %v2401_v54 }
 0x6fe   :  { %v1566_v17 = vpop.permute.xlu1 %1565 }
 0x75b   :  { %v1296_v34 = vpop.f32.mrb[12].mxu0  ;;  %v1367_v38 = vpop.f32.mrb[12].mxu1 }
 0x75c   :  { %v1297_v42 = vadd.f32 %v1296_v34, %v1226_v30  ;;  %v1298_v50 = vpop.f32.mrb[13].mxu0  ;;  %v1369_v51 = vpop.f32.mrb[13].mxu1  ;;  %v1368_v56 = vadd.f32 %v1367_v38, %v1228_v46  ;;  %v1602_v30 = vld [vmem:[#allocation2] ss:$0 sm:$0xff] }
 0x75d   :  { %v1299_v55 = vadd.f32 %v1298_v50, %v1227_v39  ;;  %v1370_v1 = vadd.f32 %v1369_v51, %v1229_v61 }
 0x75e   :  { %2193 = vtanh.f32 %v1297_v42 }
 0x75f   :  { %2195 = vtanh.f32 %v1299_v55 }
 0x760   :  { %2197 = vtanh.f32 %v1368_v56 }
 0x761   :  { %2199 = vtanh.f32 %v1370_v1 }
 0x768   :  { %v2194_v5 = vpop.eup %2193 }
 0x769   :  { %v1376_v6 = vmul.f32 0.5, %v2194_v5  ;;  %v2196_v11 = vpop.eup %2195 }
 0x76a   :  { %v1378_v24 = vmul.f32 0.5, %v2196_v11  ;;  %v2198_v27 = vpop.eup %2197 }
 0x76b   :  { %v1377_v22 = vadd.f32 0.5, %v1376_v6  ;;  %v2200_v48 = vpop.eup %2199 }
 0x76c   :  { %v1379_v32 = vadd.f32 0.5, %v1378_v24  ;;  %v1380_v53 = vmul.f32 0.5, %v2200_v48 }
 0x76d   :  { %v1383_v41 = vmul.f32 %v2198_v27, %v1377_v22 }
 0x76e   :  { %v1382_v43 = vmul.f32 %v1379_v32, %v2726_v58  ;;  %v1381_v54 = vadd.f32 0.5, %v1380_v53 }
 0x770   :  { %v1384_v44 = vadd.f32 %v1383_v41, %v1382_v43 }
 0x772   :  { %2201 = vtanh.f32 %v1384_v44 }
 0x77c   :  { %v2202_v35 = vpop.eup %2201 }
 0x77d   :  { %v1386_v19 = vmul.f32 %v2202_v35, %v1381_v54 }
 0x77f   :  { %1467 = vmatmul.mubr.f32.vlgmr.msra.gmra.mrb[14].mxu0 %v1386_v19  ;;  %1538 = vmatmul.mubr.f32.vlgmr.msra.gmra.mrb[14].mxu1 %v1386_v19 }
 0x852   :  { %v1468_v57 = vpop.f32.mrb[14].mxu0  ;;  %v1539_v20 = vpop.f32.mrb[14].mxu1 }
 0x853   :  { %v1469_v28 = vadd.f32 %v1468_v57, %v1398_v12  ;;  %v1470_v45 = vpop.f32.mrb[15].mxu0  ;;  %v1541_v36 = vpop.f32.mrb[15].mxu1  ;;  %v1540_v52 = vadd.f32 %v1539_v20, %v1400_v31 }
 0x854   :  { %v1471_v40 = vadd.f32 %v1470_v45, %v1399_v23  ;;  %v1542_v7 = vadd.f32 %v1541_v36, %v1401_v4 }
 0x855   :  { %2203 = vtanh.f32 %v1469_v28 }
 0x856   :  { %2205 = vtanh.f32 %v1471_v40 }
 0x857   :  { %2207 = vtanh.f32 %v1540_v52 }
 0x858   :  { %2209 = vtanh.f32 %v1542_v7 }
 0x85f   :  { %v2204_v9 = vpop.eup %2203 }
 0x860   :  { %v1548_v47 = vmul.f32 0.5, %v2204_v9  ;;  %v2206_v49 = vpop.eup %2205 }
 0x861   :  { %v1550_v10 = vmul.f32 0.5, %v2206_v49  ;;  %v2208_v58 = vpop.eup %2207 }
 0x862   :  { %v1549_v37 = vadd.f32 0.5, %v1548_v47  ;;  %v2210_v63 = vpop.eup %2209 }
 0x863   :  { %v1551_v16 = vadd.f32 0.5, %v1550_v10  ;;  %v1552_v0 = vmul.f32 0.5, %v2210_v63 }
 0x864   :  { %v1555_v2 = vmul.f32 %v2208_v58, %v1549_v37 }
 0x865   :  { %v1554_v59 = vmul.f32 %v1551_v16, %v1384_v44  ;;  %v1553_v13 = vadd.f32 0.5, %v1552_v0 }
 0x867   :  { %v1556_v62 = vadd.f32 %v1555_v2, %v1554_v59 }
 0x869   :  { %2211 = vtanh.f32 %v1556_v62 }
 0x873   :  { %v2212_v29 = vpop.eup %2211 }
 0x874   :  { %v1558_v21 = vmul.f32 %v2212_v29, %v1553_v13 }
 0x876   :  { %v1568_v33 = vmul.f32 %v1566_v17, %v1558_v21 }
 0x878   :  { %1570 = vrot.lane.b32.xlu0 %v1568_v33, %s2242_s5 }
 0x8ea   :  { %v1571_v25 = vpop.permute.xlu0 %1570 }
 0x8eb   :  { %v1574_v26 = vsel %vm1573_vm1, %v1571_v25, 0.0 }
 0x8ec   :  { %1575 = vadd.xlane.f32.xlu1 %v1574_v26 }
 0x979   :  { %v1576_v34 = vpop.xlane.xlu1 %1575 }
 0x97a   :  { %v1584_v38 = vadd.f32 %v1602_v30, %v1576_v34 }
 0x97c   :  { %1586 = vst.msk [vmem:[%s2792_s6] sm:$0x3] %vm1585_vm2, %v1584_v38 }
 0x97d   :  { %1591 = vsyncpa [#allocation4], 1 }

</bundles_post_ra>
